<compile_context>
chip_gen: v5e
topology: v5e:2x2
jax: 0.10.0
libtpu: 0.0.40
codegen_flags: <defaults>
</compile_context>

<pallas_src>
import functools

import numpy as np
import jax
import jax.numpy as jnp
from jax.experimental import pallas as pl
from jax.experimental.pallas import tpu as pltpu

# Use full-f32 matmuls everywhere (kernel + reference) so they agree closely.
jax.config.update("jax_default_matmul_precision", "highest")


def _layer_layout(D, E, gnn_dims, lin_dims):
    """Shared layer/column layout of the packed per-flow parameter blobs."""
    layers = []
    last = D
    for od in gnn_dims:
        layers.append(("gnn", last, od, (E + 1) * od))   # [self | edge0 .. edgeE-1]
        last = od
    for od in lin_dims:
        layers.append(("lin", last, od, od))
        last = od
    layers.append(("final", last, 2 * D, 2 * D))
    Cw = sum(l[3] for l in layers)            # total lane width of weight blob
    Rw = max(l[1] for l in layers)            # max input dim (rows of weight blob)
    Krp = 2 + 2 * (len(gnn_dims) + len(lin_dims)) + D   # loc, scale, (g,b)*, mask
    return layers, Rw, Cw, Krp


def make_glow_kernel(B, N, D, E, gnn_dims, lin_dims, eps=1e-5):
    BN = B * N
    layers, Rw, Cw, Krp = _layer_layout(D, E, gnn_dims, lin_dims)

    def bn_relu(hv, gamma_t, beta_t, feat):
        # BatchNorm1d(n_node): per-node stats over (batch, feature), biased.
        cnt = float(B * feat)
        s1 = jnp.sum(hv, axis=1, keepdims=True)          # (BN, 1)
        s2 = jnp.sum(hv * hv, axis=1, keepdims=True)     # (BN, 1)
        s1n = sum(s1[b * N:(b + 1) * N, :] for b in range(B))   # (N, 1)
        s2n = sum(s2[b * N:(b + 1) * N, :] for b in range(B))   # (N, 1)
        mean_n = s1n / cnt
        var_n = jnp.maximum(s2n / cnt - mean_n * mean_n, 0.0)
        inv_n = jax.lax.rsqrt(var_n + eps)
        mean_t = jnp.concatenate([mean_n] * B, axis=0)   # tile back to (BN, 1)
        inv_t = jnp.concatenate([inv_n] * B, axis=0)
        return jnp.maximum((hv - mean_t) * inv_t * gamma_t + beta_t, 0.0)

    def kernel(x_ref, adj_ref, rp_ref, w_ref, b_ref, out_ref, ld_ref):
        f = pl.program_id(0)

        @pl.when(f == 0)
        def _init():
            out_ref[...] = x_ref[...]                 # running state <- input
            ld_ref[...] = jnp.zeros_like(ld_ref)      # logdet accumulator

        rp = rp_ref[0]          # (BN, Krp)  per-row params (tiled over batch)
        W = w_ref[0]            # (Rw, Cw)   all weights of this flow
        bias = b_ref[0]         # (1, Cw)    all biases of this flow

        # Hoisted per-flow broadcasts.
        loc = rp[:, 0:1]
        scale = rp[:, 1:2]
        mask = rp[:, Krp - D:]                        # (BN, D)
        inv_mask = 1.0 - mask

        # ---- ActNorm2D ----
        x_in = out_ref[...]                           # state after previous flow
        h0 = scale * (x_in + loc)
        masked_x = mask * h0
        # logdet = in_dim * sum_n log|scale_n|  (scalar, same for every batch)
        logdet_act = float(D) * jnp.sum(jnp.log(jnp.abs(scale[:N, :])))

        # ---- Coupling hidden net: GraphConv/GraphLinear + BN + ReLU ----
        # TODO(synk): bf16 matmul operands would be free on v6e/v7x; kept f32
        #             so v5e elementwise path and the reference stay identical.
        h = masked_x
        col = 0
        rv = 2
        for kind, in_d, od, width in layers:
            Wl = W[:in_d, col:col + width]
            bl = bias[:, col:col + width]
            hw = jnp.dot(h, Wl, preferred_element_type=jnp.float32) + bl
            if kind == "gnn":
                # hw = [h_self | msg_e0 | ... | msg_e{E-1}], one wide matmul.
                hnew = hw[:, 0:od]
                for e in range(E):
                    hnew = hnew + jnp.dot(
                        adj_ref[e], hw[:, (e + 1) * od:(e + 2) * od],
                        preferred_element_type=jnp.float32)
            else:
                hnew = hw
            if kind == "final":
                h = hnew
            else:
                h = bn_relu(hnew, rp[:, rv:rv + 1], rp[:, rv + 1:rv + 2], od)
                rv += 2
            col += width

        # ---- Affine coupling + logdet ----
        log_s = h[:, 0:D]
        t = h[:, D:2 * D]
        log_sig = jax.nn.log_sigmoid(log_s)           # log(s), stable
        s = jnp.exp(log_sig)                          # sigmoid(log_s)
        out_ref[...] = masked_x + inv_mask * (h0 + t) * s

        rows = []
        for b in range(B):
            ld_b = logdet_act + jnp.sum(log_sig[b * N:(b + 1) * N, :])
            rows.append(jnp.full((1, 128), ld_b, dtype=jnp.float32))
        ld_ref[...] = ld_ref[...] + jnp.concatenate(rows, axis=0)

    return kernel


@functools.partial(jax.jit, static_argnames=("gnn_dims", "lin_dims"))
def glow_forward(adj, x, packed, *, gnn_dims, lin_dims):
    """Runs all stacked FlowOnGraph steps (F >= 1) in a single pallas_call."""
    B, N, D = x.shape
    E = adj.shape[1]
    BN = B * N
    _, Rw, Cw, Krp = _layer_layout(D, E, gnn_dims, lin_dims)
    F = packed["rowpack"].shape[0]

    # Block-diagonal adjacency (E, B*N, B*N): one matmul per edge type covers
    # the whole flattened batch inside the kernel.
    adjf = adj.astype(jnp.float32)
    eye_b = jnp.eye(B, dtype=jnp.float32)
    adj_bd = jnp.einsum("benm,bc->ebncm", adjf, eye_b).reshape(E, BN, BN)

    x_flat = x.astype(jnp.float32).reshape(BN, D)

    kernel = make_glow_kernel(B, N, D, E, gnn_dims, lin_dims)
    out_flat, ld = pl.pallas_call(
        kernel,
        grid=(F,),
        in_specs=[
            pl.BlockSpec((BN, D), lambda f: (0, 0)),           # x: DMA'd once
            pl.BlockSpec((E, BN, BN), lambda f: (0, 0, 0)),    # adj: DMA'd once
            pl.BlockSpec((1, BN, Krp), lambda f: (f, 0, 0)),   # per-flow row params
            pl.BlockSpec((1, Rw, Cw), lambda f: (f, 0, 0)),    # per-flow weights
            pl.BlockSpec((1, 1, Cw), lambda f: (f, 0, 0)),     # per-flow biases
        ],
        out_specs=(
            pl.BlockSpec((BN, D), lambda f: (0, 0)),           # running state / out
            pl.BlockSpec((B, 128), lambda f: (0, 0)),          # lane-dense logdet
        ),
        out_shape=(
            jax.ShapeDtypeStruct((BN, D), jnp.float32),
            jax.ShapeDtypeStruct((B, 128), jnp.float32),
        ),
        compiler_params=pltpu.CompilerParams(
            dimension_semantics=("arbitrary",)),               # flows are sequential
    )(x_flat, adj_bd, packed["rowpack"], packed["wblob"], packed["bblob"])

    out = out_flat.reshape(B, N, D).astype(x.dtype)
    return out, ld[:, 0]


def init_glow_params(key, B, N, D, E, gnn_dims, lin_dims, n_flow, n_block,
                     mask_row_size, mask_row_stride):
    """Synthetic per-flow params, pre-packed (host-side, once) into three blobs."""
    layers, Rw, Cw, Krp = _layer_layout(D, E, gnn_dims, lin_dims)
    F = n_flow * n_block
    keys = iter(jax.random.split(key, 1024))

    def rnd(shape, s=0.1):
        return np.asarray(s * jax.random.normal(next(keys), shape), np.float32)

    rowpack = np.zeros((F, B * N, Krp), np.float32)
    wblob = np.zeros((F, Rw, Cw), np.float32)
    bblob = np.zeros((F, 1, Cw), np.float32)

    for f in range(F):
        fi = f % n_flow
        masked_row = [(fi * mask_row_stride + r) % N for r in range(mask_row_size)]
        mask = np.ones((N, D), np.float32)
        mask[masked_row, :] = 0.0

        loc = rnd((N,))
        scale = 1.0 + rnd((N,))
        rowpack[f, :, 0] = np.tile(loc, B)
        rowpack[f, :, 1] = np.tile(scale, B)
        rowpack[f, :, Krp - D:] = np.tile(mask, (B, 1))

        col = 0
        rv = 2
        for kind, in_d, od, width in layers:
            if kind == "gnn":
                wblob[f, :in_d, col:col + od] = rnd((in_d, od))          # W_self
                bblob[f, 0, col:col + od] = rnd((od,))                   # b_self
                for e in range(E):
                    c0 = col + (e + 1) * od
                    wblob[f, :in_d, c0:c0 + od] = rnd((in_d, od))        # W_edge[e]
                    bblob[f, 0, c0:c0 + od] = rnd((od,))                 # b_edge[e]
            else:                                                        # lin / final
                wblob[f, :in_d, col:col + width] = rnd((in_d, width))
                bblob[f, 0, col:col + width] = rnd((width,))
            if kind != "final":
                rowpack[f, :, rv] = np.tile(1.0 + rnd((N,)), B)          # bn gamma
                rowpack[f, :, rv + 1] = np.tile(rnd((N,)), B)            # bn beta
                rv += 2
            col += width

    return {"rowpack": jnp.asarray(rowpack),
            "wblob": jnp.asarray(wblob),
            "bblob": jnp.asarray(bblob)}


def glow_reference(adj, x, packed, gnn_dims, lin_dims, eps=1e-5):
    """Pure-JAX reference of the same forward (torch-module semantics)."""
    B, N, D = x.shape
    E = adj.shape[1]
    layers, _, _, Krp = _layer_layout(D, E, gnn_dims, lin_dims)
    rowpack, wblob, bblob = packed["rowpack"], packed["wblob"], packed["bblob"]
    F = rowpack.shape[0]
    adjf = adj.astype(jnp.float32)
    out = x.astype(jnp.float32)
    logdet = jnp.zeros((B,), jnp.float32)
    for f in range(F):
        rp = rowpack[f]
        loc = rp[:N, 0].reshape(1, N, 1)
        scale = rp[:N, 1].reshape(1, N, 1)
        mask = rp[:N, Krp - D:].reshape(1, N, D)
        h0 = scale * (out + loc)
        logdet = logdet + D * jnp.sum(jnp.log(jnp.abs(scale)))
        h = mask * h0
        col, rv = 0, 2
        W, bias = wblob[f], bblob[f, 0]
        for kind, in_d, od, width in layers:
            hw = jnp.einsum("bnl,lw->bnw", h, W[:in_d, col:col + width]) \
                + bias[col:col + width]
            if kind == "gnn":
                hn = hw[..., :od]
                for e in range(E):
                    hn = hn + jnp.einsum("bnm,bmo->bno", adjf[:, e],
                                         hw[..., (e + 1) * od:(e + 2) * od])
            else:
                hn = hw
            if kind == "final":
                h = hn
            else:
                gamma = rp[:N, rv].reshape(1, N, 1)
                beta = rp[:N, rv + 1].reshape(1, N, 1)
                mean = jnp.mean(hn, axis=(0, 2), keepdims=True)
                var = jnp.mean((hn - mean) ** 2, axis=(0, 2), keepdims=True)
                h = jnp.maximum((hn - mean) * jax.lax.rsqrt(var + eps) * gamma
                                + beta, 0.0)
                rv += 2
            col += width
        log_s, t = h[..., :D], h[..., D:]
        s = jax.nn.sigmoid(log_s)
        out = mask * h0 + (1.0 - mask) * (h0 + t) * s
        logdet = logdet + jnp.sum(jnp.log(jnp.abs(s)).reshape(B, -1), axis=1)
    return out, logdet


if __name__ == "__main__":
    # GlowOnGraph(n_node=8, in_dim=4, hidden_dim_dict={'gnn':[16],'linear':[16]},
    #             n_flow=2, n_block=2, mask_row_size_list=[2],
    #             mask_row_stride_list=[1], affine=True)  -> 4 FlowOnGraph steps.
    B, N, D, E = 2, 8, 4, 4
    gnn_dims, lin_dims = (16,), (16,)
    n_flow, n_block = 2, 2
    mask_row_size, mask_row_stride = 2, 1

    key = jax.random.PRNGKey(0)
    k_adj, k_x, k_p = jax.random.split(key, 3)
    adj = jax.random.uniform(k_adj, (B, E, N, N), dtype=jnp.float32)
    x = jax.random.normal(k_x, (B, N, D), dtype=jnp.float32)
    packed = init_glow_params(k_p, B, N, D, E, gnn_dims, lin_dims,
                              n_flow, n_block, mask_row_size, mask_row_stride)

    out, logdet = glow_forward(adj, x, packed, gnn_dims=gnn_dims,
                               lin_dims=lin_dims)
    out, logdet = jax.block_until_ready((out, logdet))

    ref_out, ref_logdet = glow_reference(adj, x, packed, gnn_dims, lin_dims)

    assert out.shape == (B, N, D) and logdet.shape == (B,)
    assert bool(jnp.all(jnp.isfinite(out))) and bool(jnp.all(jnp.isfinite(logdet)))
    assert bool(jnp.allclose(out, ref_out, rtol=1e-2, atol=1e-2))
    assert bool(jnp.allclose(logdet, ref_logdet, rtol=1e-2, atol=1e-2))
    print("KERNEL_OK")
</pallas_src>

<mosaic_0001>
module attributes {stable_mosaic.version = 11 : i64} {
  func.func @kernel(%arg0: i32, %arg1: memref<16x4xf32, #tpu.memory_space<vmem>>, %arg2: memref<4x16x16xf32, #tpu.memory_space<vmem>>, %arg3: memref<1x16x10xf32, #tpu.memory_space<vmem>>, %arg4: memref<1x16x104xf32, #tpu.memory_space<vmem>>, %arg5: memref<1x1x104xf32, #tpu.memory_space<vmem>>, %arg6: memref<16x4xf32, #tpu.memory_space<vmem>>, %arg7: memref<2x128xf32, #tpu.memory_space<vmem>>) attributes {dimension_semantics = [#tpu.dimension_semantics<arbitrary>], iteration_bounds = array<i64: 4>, scalar_prefetch = 0 : i64, scratch_operands = 0 : i64, tpu.core_type = #tpu.core_type<tc>, window_params = [{pipeline_mode = #tpu.pipeline_mode<synchronous>, transform_indices = @transform_0, window_bounds = array<i64: 16, 4>}, {pipeline_mode = #tpu.pipeline_mode<synchronous>, transform_indices = @transform_1, window_bounds = array<i64: 4, 16, 16>}, {transform_indices = @transform_2, window_bounds = array<i64: 1, 16, 10>}, {transform_indices = @transform_3, window_bounds = array<i64: 1, 16, 104>}, {transform_indices = @transform_4, window_bounds = array<i64: 1, 1, 104>}, {pipeline_mode = #tpu.pipeline_mode<synchronous>, transform_indices = @transform_5, window_bounds = array<i64: 16, 4>}, {pipeline_mode = #tpu.pipeline_mode<synchronous>, transform_indices = @transform_6, window_bounds = array<i64: 2, 128>}]} {
    %c0_i32 = arith.constant 0 : i32
    %0 = arith.cmpi eq, %arg0, %c0_i32 : i32
    %1 = arith.extui %0 : i1 to i32
    %c0_i32_0 = arith.constant 0 : i32
    %2 = arith.cmpi ne, %1, %c0_i32_0 : i32
    scf.if %2 {
      %c0_59 = arith.constant 0 : index
      %c0_60 = arith.constant 0 : index
      %188 = vector.load %arg1[%c0_59, %c0_60] : memref<16x4xf32, #tpu.memory_space<vmem>>, vector<16x4xf32>
      %c0_61 = arith.constant 0 : index
      %c0_62 = arith.constant 0 : index
      %189 = vector.load %arg6[%c0_61, %c0_62] : memref<16x4xf32, #tpu.memory_space<vmem>>, vector<16x4xf32>
      tpu.vector_store %arg6[%c0_61, %c0_62], %188 {strides = array<i32>} : memref<16x4xf32, #tpu.memory_space<vmem>>, vector<16x4xf32>,
      %cst_63 = arith.constant 0.000000e+00 : f32
      %190 = vector.broadcast %cst_63 : f32 to vector<2x128xf32>
      %c0_64 = arith.constant 0 : index
      %c0_65 = arith.constant 0 : index
      %191 = vector.load %arg7[%c0_64, %c0_65] : memref<2x128xf32, #tpu.memory_space<vmem>>, vector<2x128xf32>
      tpu.vector_store %arg7[%c0_64, %c0_65], %190 {strides = array<i32>} : memref<2x128xf32, #tpu.memory_space<vmem>>, vector<2x128xf32>,
    } else {
    }
    %c0 = arith.constant 0 : index
    %c0_1 = arith.constant 0 : index
    %c0_2 = arith.constant 0 : index
    %3 = vector.load %arg3[%c0, %c0_1, %c0_2] : memref<1x16x10xf32, #tpu.memory_space<vmem>>, vector<1x16x10xf32>
    %4 = vector.shape_cast %3 : vector<1x16x10xf32> to vector<16x10xf32>
    %c0_3 = arith.constant 0 : index
    %c0_4 = arith.constant 0 : index
    %c0_5 = arith.constant 0 : index
    %5 = vector.load %arg4[%c0_3, %c0_4, %c0_5] : memref<1x16x104xf32, #tpu.memory_space<vmem>>, vector<1x16x104xf32>
    %6 = vector.shape_cast %5 : vector<1x16x104xf32> to vector<16x104xf32>
    %c0_6 = arith.constant 0 : index
    %c0_7 = arith.constant 0 : index
    %c0_8 = arith.constant 0 : index
    %7 = vector.load %arg5[%c0_6, %c0_7, %c0_8] : memref<1x1x104xf32, #tpu.memory_space<vmem>>, vector<1x1x104xf32>
    %8 = vector.shape_cast %7 : vector<1x1x104xf32> to vector<1x104xf32>
    %9 = vector.extract_strided_slice %4 {offsets = [0, 0], sizes = [16, 1], strides = [1, 1]} : vector<16x10xf32> to vector<16x1xf32>
    %10 = vector.extract_strided_slice %4 {offsets = [0, 1], sizes = [16, 1], strides = [1, 1]} : vector<16x10xf32> to vector<16x1xf32>
    %11 = vector.extract_strided_slice %4 {offsets = [0, 6], sizes = [16, 4], strides = [1, 1]} : vector<16x10xf32> to vector<16x4xf32>
    %cst = arith.constant 1.000000e+00 : f32
    %12 = vector.broadcast %cst : f32 to vector<16x4xf32>
    %13 = arith.subf %12, %11 : vector<16x4xf32>
    %c0_9 = arith.constant 0 : index
    %c0_10 = arith.constant 0 : index
    %14 = vector.load %arg6[%c0_9, %c0_10] : memref<16x4xf32, #tpu.memory_space<vmem>>, vector<16x4xf32>
    %15 = vector.broadcast %9 : vector<16x1xf32> to vector<16x4xf32>
    %16 = arith.addf %14, %15 : vector<16x4xf32>
    %17 = vector.broadcast %10 : vector<16x1xf32> to vector<16x4xf32>
    %18 = arith.mulf %17, %16 : vector<16x4xf32>
    %19 = arith.mulf %11, %18 : vector<16x4xf32>
    %20 = vector.extract_strided_slice %10 {offsets = [0, 0], sizes = [8, 1], strides = [1, 1]} : vector<16x1xf32> to vector<8x1xf32>
    %21 = math.absf %20 : vector<8x1xf32>
    %22 = math.log %21 : vector<8x1xf32>
    %23 = vector.shape_cast %22 : vector<8x1xf32> to vector<1x8x1xf32>
    %cst_11 = arith.constant dense<0.000000e+00> : vector<1xf32>
    %24 = vector.multi_reduction <add>, %23, %cst_11 [1, 2] : vector<1x8x1xf32> to vector<1xf32>
    %25 = vector.shape_cast %24 : vector<1xf32> to vector<1x1x1xf32>
    %26 = vector.extract %25[0, 0, 0] : f32 from vector<1x1x1xf32>
    %cst_12 = arith.constant 4.000000e+00 : f32
    %27 = arith.mulf %cst_12, %26 : f32
    %28 = vector.extract_strided_slice %6 {offsets = [0, 0], sizes = [4, 80], strides = [1, 1]} : vector<16x104xf32> to vector<4x80xf32>
    %29 = vector.extract_strided_slice %8 {offsets = [0, 0], sizes = [1, 80], strides = [1, 1]} : vector<1x104xf32> to vector<1x80xf32>
    %cst_13 = arith.constant dense<0.000000e+00> : vector<16x80xf32>
    %30 = tpu.matmul %19, %28, %cst_13 {dimension_numbers = #tpu.dot_dimension_numbers<[1], [0], [0], [1], [0, 0, 1, 1], [], []>, precision = #tpu.contract_precision<fp32>} : vector<16x4xf32>, vector<4x80xf32>, vector<16x80xf32> -> vector<16x80xf32>
    %31 = vector.broadcast %29 : vector<1x80xf32> to vector<16x80xf32>
    %32 = arith.addf %30, %31 : vector<16x80xf32>
    %33 = vector.extract_strided_slice %32 {offsets = [0, 0], sizes = [16, 16], strides = [1, 1]} : vector<16x80xf32> to vector<16x16xf32>
    %c0_14 = arith.constant 0 : index
    %c0_15 = arith.constant 0 : index
    %c0_16 = arith.constant 0 : index
    %34 = vector.load %arg2[%c0_14, %c0_15, %c0_16] : memref<4x16x16xf32, #tpu.memory_space<vmem>>, vector<1x16x16xf32>
    %35 = vector.shape_cast %34 : vector<1x16x16xf32> to vector<16x16xf32>
    %36 = vector.extract_strided_slice %32 {offsets = [0, 16], sizes = [16, 16], strides = [1, 1]} : vector<16x80xf32> to vector<16x16xf32>
    %cst_17 = arith.constant dense<0.000000e+00> : vector<16x16xf32>
    %37 = tpu.matmul %35, %36, %cst_17 {dimension_numbers = #tpu.dot_dimension_numbers<[1], [0], [0], [1], [0, 0, 1, 1], [], []>, precision = #tpu.contract_precision<fp32>} : vector<16x16xf32>, vector<16x16xf32>, vector<16x16xf32> -> vector<16x16xf32>
    %38 = arith.addf %33, %37 : vector<16x16xf32>
    %c1 = arith.constant 1 : index
    %c0_18 = arith.constant 0 : index
    %c0_19 = arith.constant 0 : index
    %39 = vector.load %arg2[%c1, %c0_18, %c0_19] : memref<4x16x16xf32, #tpu.memory_space<vmem>>, vector<1x16x16xf32>
    %40 = vector.shape_cast %39 : vector<1x16x16xf32> to vector<16x16xf32>
    %41 = vector.extract_strided_slice %32 {offsets = [0, 32], sizes = [16, 16], strides = [1, 1]} : vector<16x80xf32> to vector<16x16xf32>
    %cst_20 = arith.constant dense<0.000000e+00> : vector<16x16xf32>
    %42 = tpu.matmul %40, %41, %cst_20 {dimension_numbers = #tpu.dot_dimension_numbers<[1], [0], [0], [1], [0, 0, 1, 1], [], []>, precision = #tpu.contract_precision<fp32>} : vector<16x16xf32>, vector<16x16xf32>, vector<16x16xf32> -> vector<16x16xf32>
    %43 = arith.addf %38, %42 : vector<16x16xf32>
    %c2 = arith.constant 2 : index
    %c0_21 = arith.constant 0 : index
    %c0_22 = arith.constant 0 : index
    %44 = vector.load %arg2[%c2, %c0_21, %c0_22] : memref<4x16x16xf32, #tpu.memory_space<vmem>>, vector<1x16x16xf32>
    %45 = vector.shape_cast %44 : vector<1x16x16xf32> to vector<16x16xf32>
    %46 = vector.extract_strided_slice %32 {offsets = [0, 48], sizes = [16, 16], strides = [1, 1]} : vector<16x80xf32> to vector<16x16xf32>
    %cst_23 = arith.constant dense<0.000000e+00> : vector<16x16xf32>
    %47 = tpu.matmul %45, %46, %cst_23 {dimension_numbers = #tpu.dot_dimension_numbers<[1], [0], [0], [1], [0, 0, 1, 1], [], []>, precision = #tpu.contract_precision<fp32>} : vector<16x16xf32>, vector<16x16xf32>, vector<16x16xf32> -> vector<16x16xf32>
    %48 = arith.addf %43, %47 : vector<16x16xf32>
    %c3 = arith.constant 3 : index
    %c0_24 = arith.constant 0 : index
    %c0_25 = arith.constant 0 : index
    %49 = vector.load %arg2[%c3, %c0_24, %c0_25] : memref<4x16x16xf32, #tpu.memory_space<vmem>>, vector<1x16x16xf32>
    %50 = vector.shape_cast %49 : vector<1x16x16xf32> to vector<16x16xf32>
    %51 = vector.extract_strided_slice %32 {offsets = [0, 64], sizes = [16, 16], strides = [1, 1]} : vector<16x80xf32> to vector<16x16xf32>
    %cst_26 = arith.constant dense<0.000000e+00> : vector<16x16xf32>
    %52 = tpu.matmul %50, %51, %cst_26 {dimension_numbers = #tpu.dot_dimension_numbers<[1], [0], [0], [1], [0, 0, 1, 1], [], []>, precision = #tpu.contract_precision<fp32>} : vector<16x16xf32>, vector<16x16xf32>, vector<16x16xf32> -> vector<16x16xf32>
    %53 = arith.addf %48, %52 : vector<16x16xf32>
    %54 = vector.extract_strided_slice %4 {offsets = [0, 2], sizes = [16, 1], strides = [1, 1]} : vector<16x10xf32> to vector<16x1xf32>
    %55 = vector.extract_strided_slice %4 {offsets = [0, 3], sizes = [16, 1], strides = [1, 1]} : vector<16x10xf32> to vector<16x1xf32>
    %cst_27 = arith.constant dense<0.000000e+00> : vector<16xf32>
    %56 = vector.multi_reduction <add>, %53, %cst_27 [1] : vector<16x16xf32> to vector<16xf32>
    %57 = vector.shape_cast %56 : vector<16xf32> to vector<16x1xf32>
    %58 = arith.mulf %53, %53 : vector<16x16xf32>
    %cst_28 = arith.constant dense<0.000000e+00> : vector<16xf32>
    %59 = vector.multi_reduction <add>, %58, %cst_28 [1] : vector<16x16xf32> to vector<16xf32>
    %60 = vector.shape_cast %59 : vector<16xf32> to vector<16x1xf32>
    %61 = vector.extract_strided_slice %57 {offsets = [0, 0], sizes = [8, 1], strides = [1, 1]} : vector<16x1xf32> to vector<8x1xf32>
    %cst_29 = arith.constant 0.000000e+00 : f32
    %62 = vector.broadcast %cst_29 : f32 to vector<8x1xf32>
    %63 = arith.addf %62, %61 : vector<8x1xf32>
    %64 = vector.extract_strided_slice %57 {offsets = [8, 0], sizes = [8, 1], strides = [1, 1]} : vector<16x1xf32> to vector<8x1xf32>
    %65 = arith.addf %63, %64 : vector<8x1xf32>
    %66 = vector.extract_strided_slice %60 {offsets = [0, 0], sizes = [8, 1], strides = [1, 1]} : vector<16x1xf32> to vector<8x1xf32>
    %cst_30 = arith.constant 0.000000e+00 : f32
    %67 = vector.broadcast %cst_30 : f32 to vector<8x1xf32>
    %68 = arith.addf %67, %66 : vector<8x1xf32>
    %69 = vector.extract_strided_slice %60 {offsets = [8, 0], sizes = [8, 1], strides = [1, 1]} : vector<16x1xf32> to vector<8x1xf32>
    %70 = arith.addf %68, %69 : vector<8x1xf32>
    %cst_31 = arith.constant 3.200000e+01 : f32
    %71 = vector.broadcast %cst_31 : f32 to vector<8x1xf32>
    %72 = arith.divf %65, %71 : vector<8x1xf32>
    %cst_32 = arith.constant 3.200000e+01 : f32
    %73 = vector.broadcast %cst_32 : f32 to vector<8x1xf32>
    %74 = arith.divf %70, %73 : vector<8x1xf32>
    %75 = arith.mulf %72, %72 : vector<8x1xf32>
    %76 = arith.subf %74, %75 : vector<8x1xf32>
    %cst_33 = arith.constant 0.000000e+00 : f32
    %77 = vector.broadcast %cst_33 : f32 to vector<8x1xf32>
    %78 = arith.maximumf %76, %77 : vector<8x1xf32>
    %cst_34 = arith.constant 9.99999974E-6 : f32
    %79 = vector.broadcast %cst_34 : f32 to vector<8x1xf32>
    %80 = arith.addf %78, %79 : vector<8x1xf32>
    %81 = math.rsqrt %80 : vector<8x1xf32>
    %82 = tpu.concatenate %72, %72 in 0 : vector<8x1xf32>, vector<8x1xf32> -> vector<16x1xf32>
    %83 = tpu.concatenate %81, %81 in 0 : vector<8x1xf32>, vector<8x1xf32> -> vector<16x1xf32>
    %84 = vector.broadcast %82 : vector<16x1xf32> to vector<16x16xf32>
    %85 = arith.subf %53, %84 : vector<16x16xf32>
    %86 = vector.broadcast %83 : vector<16x1xf32> to vector<16x16xf32>
    %87 = arith.mulf %85, %86 : vector<16x16xf32>
    %88 = vector.broadcast %54 : vector<16x1xf32> to vector<16x16xf32>
    %89 = arith.mulf %87, %88 : vector<16x16xf32>
    %90 = vector.broadcast %55 : vector<16x1xf32> to vector<16x16xf32>
    %91 = arith.addf %89, %90 : vector<16x16xf32>
    %cst_35 = arith.constant 0.000000e+00 : f32
    %92 = vector.broadcast %cst_35 : f32 to vector<16x16xf32>
    %93 = arith.maximumf %91, %92 : vector<16x16xf32>
    %94 = vector.extract_strided_slice %6 {offsets = [0, 80], sizes = [16, 16], strides = [1, 1]} : vector<16x104xf32> to vector<16x16xf32>
    %95 = vector.extract_strided_slice %8 {offsets = [0, 80], sizes = [1, 16], strides = [1, 1]} : vector<1x104xf32> to vector<1x16xf32>
    %cst_36 = arith.constant dense<0.000000e+00> : vector<16x16xf32>
    %96 = tpu.matmul %93, %94, %cst_36 {dimension_numbers = #tpu.dot_dimension_numbers<[1], [0], [0], [1], [0, 0, 1, 1], [], []>, precision = #tpu.contract_precision<fp32>} : vector<16x16xf32>, vector<16x16xf32>, vector<16x16xf32> -> vector<16x16xf32>
    %97 = vector.broadcast %95 : vector<1x16xf32> to vector<16x16xf32>
    %98 = arith.addf %96, %97 : vector<16x16xf32>
    %99 = vector.extract_strided_slice %4 {offsets = [0, 4], sizes = [16, 1], strides = [1, 1]} : vector<16x10xf32> to vector<16x1xf32>
    %100 = vector.extract_strided_slice %4 {offsets = [0, 5], sizes = [16, 1], strides = [1, 1]} : vector<16x10xf32> to vector<16x1xf32>
    %cst_37 = arith.constant dense<0.000000e+00> : vector<16xf32>
    %101 = vector.multi_reduction <add>, %98, %cst_37 [1] : vector<16x16xf32> to vector<16xf32>
    %102 = vector.shape_cast %101 : vector<16xf32> to vector<16x1xf32>
    %103 = arith.mulf %98, %98 : vector<16x16xf32>
    %cst_38 = arith.constant dense<0.000000e+00> : vector<16xf32>
    %104 = vector.multi_reduction <add>, %103, %cst_38 [1] : vector<16x16xf32> to vector<16xf32>
    %105 = vector.shape_cast %104 : vector<16xf32> to vector<16x1xf32>
    %106 = vector.extract_strided_slice %102 {offsets = [0, 0], sizes = [8, 1], strides = [1, 1]} : vector<16x1xf32> to vector<8x1xf32>
    %cst_39 = arith.constant 0.000000e+00 : f32
    %107 = vector.broadcast %cst_39 : f32 to vector<8x1xf32>
    %108 = arith.addf %107, %106 : vector<8x1xf32>
    %109 = vector.extract_strided_slice %102 {offsets = [8, 0], sizes = [8, 1], strides = [1, 1]} : vector<16x1xf32> to vector<8x1xf32>
    %110 = arith.addf %108, %109 : vector<8x1xf32>
    %111 = vector.extract_strided_slice %105 {offsets = [0, 0], sizes = [8, 1], strides = [1, 1]} : vector<16x1xf32> to vector<8x1xf32>
    %cst_40 = arith.constant 0.000000e+00 : f32
    %112 = vector.broadcast %cst_40 : f32 to vector<8x1xf32>
    %113 = arith.addf %112, %111 : vector<8x1xf32>
    %114 = vector.extract_strided_slice %105 {offsets = [8, 0], sizes = [8, 1], strides = [1, 1]} : vector<16x1xf32> to vector<8x1xf32>
    %115 = arith.addf %113, %114 : vector<8x1xf32>
    %cst_41 = arith.constant 3.200000e+01 : f32
    %116 = vector.broadcast %cst_41 : f32 to vector<8x1xf32>
    %117 = arith.divf %110, %116 : vector<8x1xf32>
    %cst_42 = arith.constant 3.200000e+01 : f32
    %118 = vector.broadcast %cst_42 : f32 to vector<8x1xf32>
    %119 = arith.divf %115, %118 : vector<8x1xf32>
    %120 = arith.mulf %117, %117 : vector<8x1xf32>
    %121 = arith.subf %119, %120 : vector<8x1xf32>
    %cst_43 = arith.constant 0.000000e+00 : f32
    %122 = vector.broadcast %cst_43 : f32 to vector<8x1xf32>
    %123 = arith.maximumf %121, %122 : vector<8x1xf32>
    %cst_44 = arith.constant 9.99999974E-6 : f32
    %124 = vector.broadcast %cst_44 : f32 to vector<8x1xf32>
    %125 = arith.addf %123, %124 : vector<8x1xf32>
    %126 = math.rsqrt %125 : vector<8x1xf32>
    %127 = tpu.concatenate %117, %117 in 0 : vector<8x1xf32>, vector<8x1xf32> -> vector<16x1xf32>
    %128 = tpu.concatenate %126, %126 in 0 : vector<8x1xf32>, vector<8x1xf32> -> vector<16x1xf32>
    %129 = vector.broadcast %127 : vector<16x1xf32> to vector<16x16xf32>
    %130 = arith.subf %98, %129 : vector<16x16xf32>
    %131 = vector.broadcast %128 : vector<16x1xf32> to vector<16x16xf32>
    %132 = arith.mulf %130, %131 : vector<16x16xf32>
    %133 = vector.broadcast %99 : vector<16x1xf32> to vector<16x16xf32>
    %134 = arith.mulf %132, %133 : vector<16x16xf32>
    %135 = vector.broadcast %100 : vector<16x1xf32> to vector<16x16xf32>
    %136 = arith.addf %134, %135 : vector<16x16xf32>
    %cst_45 = arith.constant 0.000000e+00 : f32
    %137 = vector.broadcast %cst_45 : f32 to vector<16x16xf32>
    %138 = arith.maximumf %136, %137 : vector<16x16xf32>
    %139 = vector.extract_strided_slice %6 {offsets = [0, 96], sizes = [16, 8], strides = [1, 1]} : vector<16x104xf32> to vector<16x8xf32>
    %140 = vector.extract_strided_slice %8 {offsets = [0, 96], sizes = [1, 8], strides = [1, 1]} : vector<1x104xf32> to vector<1x8xf32>
    %cst_46 = arith.constant dense<0.000000e+00> : vector<16x8xf32>
    %141 = tpu.matmul %138, %139, %cst_46 {dimension_numbers = #tpu.dot_dimension_numbers<[1], [0], [0], [1], [0, 0, 1, 1], [], []>, precision = #tpu.contract_precision<fp32>} : vector<16x16xf32>, vector<16x8xf32>, vector<16x8xf32> -> vector<16x8xf32>
    %142 = vector.broadcast %140 : vector<1x8xf32> to vector<16x8xf32>
    %143 = arith.addf %141, %142 : vector<16x8xf32>
    %144 = vector.extract_strided_slice %143 {offsets = [0, 0], sizes = [16, 4], strides = [1, 1]} : vector<16x8xf32> to vector<16x4xf32>
    %145 = vector.extract_strided_slice %143 {offsets = [0, 4], sizes = [16, 4], strides = [1, 1]} : vector<16x8xf32> to vector<16x4xf32>
    %cst_47 = arith.constant 0.000000e+00 : f32
    %146 = vector.broadcast %cst_47 : f32 to vector<16x4xf32>
    %147 = arith.subf %146, %144 : vector<16x4xf32>
    %cst_48 = arith.constant 0.000000e+00 : f32
    %148 = vector.broadcast %cst_48 : f32 to vector<16x4xf32>
    %149 = arith.maximumf %147, %148 : vector<16x4xf32>
    %150 = vector.broadcast %cst_48 : f32 to vector<16x4xf32>
    %151 = arith.subf %147, %150 : vector<16x4xf32>
    %152 = arith.cmpf one, %151, %151 : vector<16x4xf32>
    %153 = vector.broadcast %cst_48 : f32 to vector<16x4xf32>
    %154 = arith.addf %147, %153 : vector<16x4xf32>
    %155 = math.absf %151 : vector<16x4xf32>
    %cst_49 = arith.constant 0.000000e+00 : f32
    %156 = vector.broadcast %cst_49 : f32 to vector<16x4xf32>
    %157 = arith.subf %156, %155 : vector<16x4xf32>
    %158 = math.exp %157 : vector<16x4xf32>
    %159 = math.log1p %158 : vector<16x4xf32>
    %160 = arith.addf %149, %159 : vector<16x4xf32>
    %161 = arith.select %152, %154, %160 : vector<16x4xi1>, vector<16x4xf32>
    %cst_50 = arith.constant 0.000000e+00 : f32
    %162 = vector.broadcast %cst_50 : f32 to vector<16x4xf32>
    %163 = arith.subf %162, %161 : vector<16x4xf32>
    %164 = math.exp %163 : vector<16x4xf32>
    %165 = arith.addf %18, %145 : vector<16x4xf32>
    %166 = arith.mulf %13, %165 : vector<16x4xf32>
    %167 = arith.mulf %166, %164 : vector<16x4xf32>
    %168 = arith.addf %19, %167 : vector<16x4xf32>
    %c0_51 = arith.constant 0 : index
    %c0_52 = arith.constant 0 : index
    %169 = vector.load %arg6[%c0_51, %c0_52] : memref<16x4xf32, #tpu.memory_space<vmem>>, vector<16x4xf32>
    tpu.vector_store %arg6[%c0_51, %c0_52], %168 {strides = array<i32>} : memref<16x4xf32, #tpu.memory_space<vmem>>, vector<16x4xf32>,
    %170 = vector.extract_strided_slice %163 {offsets = [0, 0], sizes = [8, 4], strides = [1, 1]} : vector<16x4xf32> to vector<8x4xf32>
    %171 = vector.shape_cast %170 : vector<8x4xf32> to vector<1x8x4xf32>
    %cst_53 = arith.constant dense<0.000000e+00> : vector<1xf32>
    %172 = vector.multi_reduction <add>, %171, %cst_53 [1, 2] : vector<1x8x4xf32> to vector<1xf32>
    %173 = vector.shape_cast %172 : vector<1xf32> to vector<1x1x1xf32>
    %174 = vector.extract %173[0, 0, 0] : f32 from vector<1x1x1xf32>
    %175 = arith.addf %27, %174 : f32
    %176 = vector.broadcast %175 : f32 to vector<1x128xf32>
    %177 = vector.extract_strided_slice %163 {offsets = [8, 0], sizes = [8, 4], strides = [1, 1]} : vector<16x4xf32> to vector<8x4xf32>
    %178 = vector.shape_cast %177 : vector<8x4xf32> to vector<1x8x4xf32>
    %cst_54 = arith.constant dense<0.000000e+00> : vector<1xf32>
    %179 = vector.multi_reduction <add>, %178, %cst_54 [1, 2] : vector<1x8x4xf32> to vector<1xf32>
    %180 = vector.shape_cast %179 : vector<1xf32> to vector<1x1x1xf32>
    %181 = vector.extract %180[0, 0, 0] : f32 from vector<1x1x1xf32>
    %182 = arith.addf %27, %181 : f32
    %183 = vector.broadcast %182 : f32 to vector<1x128xf32>
    %c0_55 = arith.constant 0 : index
    %c0_56 = arith.constant 0 : index
    %184 = vector.load %arg7[%c0_55, %c0_56] : memref<2x128xf32, #tpu.memory_space<vmem>>, vector<2x128xf32>
    %185 = tpu.concatenate %176, %183 in 0 : vector<1x128xf32>, vector<1x128xf32> -> vector<2x128xf32>
    %186 = arith.addf %184, %185 : vector<2x128xf32>
    %c0_57 = arith.constant 0 : index
    %c0_58 = arith.constant 0 : index
    %187 = vector.load %arg7[%c0_57, %c0_58] : memref<2x128xf32, #tpu.memory_space<vmem>>, vector<2x128xf32>
    tpu.vector_store %arg7[%c0_57, %c0_58], %186 {strides = array<i32>} : memref<2x128xf32, #tpu.memory_space<vmem>>, vector<2x128xf32>,
    return
  }
  func.func @transform_0(%arg0: i32) -> (i32, i32) {
    %c0_i32 = arith.constant 0 : i32
    %c0_i32_0 = arith.constant 0 : i32
    %c0_i32_1 = arith.constant 0 : i32
    return %c0_i32, %c0_i32_0 : i32, i32
  }
  func.func @transform_1(%arg0: i32) -> (i32, i32, i32) {
    %c0_i32 = arith.constant 0 : i32
    %c0_i32_0 = arith.constant 0 : i32
    %c0_i32_1 = arith.constant 0 : i32
    %c0_i32_2 = arith.constant 0 : i32
    return %c0_i32, %c0_i32_0, %c0_i32_1 : i32, i32, i32
  }
  func.func @transform_2(%arg0: i32) -> (i32, i32, i32) {
    %c0_i32 = arith.constant 0 : i32
    %c0_i32_0 = arith.constant 0 : i32
    %c0_i32_1 = arith.constant 0 : i32
    return %arg0, %c0_i32, %c0_i32_0 : i32, i32, i32
  }
  func.func @transform_3(%arg0: i32) -> (i32, i32, i32) {
    %c0_i32 = arith.constant 0 : i32
    %c0_i32_0 = arith.constant 0 : i32
    %c0_i32_1 = arith.constant 0 : i32
    return %arg0, %c0_i32, %c0_i32_0 : i32, i32, i32
  }
  func.func @transform_4(%arg0: i32) -> (i32, i32, i32) {
    %c0_i32 = arith.constant 0 : i32
    %c0_i32_0 = arith.constant 0 : i32
    %c0_i32_1 = arith.constant 0 : i32
    return %arg0, %c0_i32, %c0_i32_0 : i32, i32, i32
  }
  func.func @transform_5(%arg0: i32) -> (i32, i32) {
    %c0_i32 = arith.constant 0 : i32
    %c0_i32_0 = arith.constant 0 : i32
    %c0_i32_1 = arith.constant 0 : i32
    return %c0_i32, %c0_i32_0 : i32, i32
  }
  func.func @transform_6(%arg0: i32) -> (i32, i32) {
    %c0_i32 = arith.constant 0 : i32
    %c0_i32_0 = arith.constant 0 : i32
    %c0_i32_1 = arith.constant 0 : i32
    return %c0_i32, %c0_i32_0 : i32, i32
  }
}

</mosaic_0001>

<bundles_post_ra>
// kernel: glow_forward.1
= control target key start
LH: loop header
LB: loop body
LE: loop exit
PB: predicated region body
PF: predicated region fallthrough
CT: control target
= control target key end

     0   :  { %s2245_s21 = smov 0   ;;  %s2568_s0 = inlined_call_operand.vmem [shape: f32[16,4], index: 0, kind: input, shape index: {}]   ;;  %s2569_s1 = inlined_call_operand.vmem [shape: f32[4,16,16], index: 1, kind: input, shape index: {}]   ;;  %s2570_s2 = inlined_call_operand.vmem [shape: f32[4,16,10], index: 2, kind: input, shape index: {}]   ;;  %s2571_s3 = inlined_call_operand.vmem [shape: f32[4,16,104], index: 3, kind: input, shape index: {}]   ;;  %s2572_s4 = inlined_call_operand.vmem [shape: f32[4,1,104], index: 4, kind: input, shape index: {}]   ;;  %s2573_s5 = inlined_call_operand.vmem [shape: f32[16,4], index: 5, kind: output, shape index: {0}]   ;;  %s2574_s6 = inlined_call_operand.vmem [shape: f32[2,128], index: 6, kind: output, shape index: {1}]  }
   0x1 LB: > { %s2092_s22 = sadd.s32 4294967295, %s2190_s21   ;;  %p2095_p0 = scmp.ge.s32.totalorder %s2190_s21, 1  ;;  %s2190_s21 = sphi %s2245_s21, %s17_s21  }
   0x2   : > { %p223_p1 = scmp.lt.s32.totalorder %s2190_s21, 5 }
   0x4   : > { %p224_p2 = pnand %p2095_p0, %p223_p1 }
   0x5   : > { %p256_p3 = scmp.lt.s32.totalorder (!%p224_p2), %s2092_s22, 3  ;;  %p2100_p4 = scmp.ne.s32.totalorder (!%p224_p2), %s2092_s22, 0 }
   0x6   : > { %227 = sbr.rel (%p224_p2) target bundleno = 2117 (0x845), region = 40 }
   0xb   : > { %s257_s23 = scalar_select %p256_p3, %s2092_s22, 3 }
   0xc   : > { %272 = sbr.rel (%p2100_p4) target bundleno = 21 (0x15), region = 44 }
   0xd   : > { %s2109_s24 = sshll.u32 %s257_s23, 4  ;;  %s2256_s27 = scalar_lea.vmem %s2572_s4, %s257_s23 }
   0xe   : > { %s2261_s30 = scalar_lea.vmem %s2570_s2, %s2109_s24  ;;  %s2266_s9 = scalar_lea.vmem %s2571_s3, %s2109_s24 }
  0x11   : > { %v273_v0 = vld [vmem:[%s2568_s0] sm:$0xff]  ;;  %vm275_vm0 = vcmask 31744   ;;  %v274_v1 = vld [vmem:[%s2568_s0 + $0x8] sm:$0xff]  ;;  %v2192_v2 = vmov 0.0  }
  0x12   : > { %276 = vst.msk [vmem:[%s2573_s5] sm:$0xff] %vm275_vm0, %v273_v0 }
  0x13   : > { %277 = vst.msk [vmem:[%s2573_s5 + $0x8] sm:$0xff] %vm275_vm0, %v274_v1 }
  0x14   : > { %278 = vst [vmem:[%s2574_s6] sm:$0x3] %v2192_v2 }
  0x15 PF: > { %v2284_v3 = vld [vmem:[%s2261_s30 + $0x8] sm:$0xff]  ;;  %v2287_v4 = vld [vmem:[%s2261_s30] sm:$0xff]  ;;  %v2193_v5 = vmov 0   ;;  %v2194_v6 = vmov 1   ;;  %s2195_s25 = smov 6   ;;  %s2196_s26 = smov 122  }
  0x16   : > { %2145 = vset.pattern.permute.xlu0 %v2193_v5  ;;  %2147 = vset.pattern.permute.xlu1 %v2193_v5  ;;  %v2322_v21 = vld [vmem:[%s2266_s9] sm:$0xff]  ;;  %vm353_vm1 = vcmask 1043456   ;;  %vm348_vm2 = vcmask 31744   ;;  %s2197_s28 = smov 112   ;;  %s2198_s29 = smov 80   ;;  %vm544_vm3 = vcmask 130048  }
  0x17   : > { %295 = vperm.xlu0 %2145, %v2284_v3   ;;  %290 = vperm.xlu1 %2147, %v2287_v4   ;;  %v355_v22 = vsel %vm353_vm1, %v2322_v21, 0  ;;  %v2328_v43 = vld [vmem:[%s2256_s27] ss:$0 sm:$0xff]  ;;  %s2199_s7 = smov 96   ;;  %s2200_s8 = smov 64   ;;  %vm327_vm11 = vcmask 7168  }
  0x18   : > { %2149 = vset.pattern.permute.xlu2 %v2193_v5  ;;  %v372_v23 = vand.u32 4294901760, %v355_v22  ;;  %vm2033_vm0 = vcmask 1040384  }
  0x19   : > { %v286_v12 = vld [vmem:[%s2573_s5] sm:$0xff] }
  0x1a   : > { %v287_v9 = vld [vmem:[%s2573_s5 + $0x8] sm:$0xff]  ;;  %v407_v24 = vsub.f32 %v355_v22, %v372_v23  ;;  %373 = vmatpush.msra.mxu0 %v372_v23  ;;  %2111 = vmatpush.msra.mxu2 %v372_v23 }
  0x1c   : > { %v408_v25 = vand.u32 4294901760, %v407_v24  ;;  %438 = vmatpush.msrb.mxu2 %v407_v24 }
  0x1e   : > { %v409_v26 = vsub.f32 %v407_v24, %v408_v25  ;;  %498 = vmatpush.msrb.mxu0 %v408_v25 }
  0x1f   : > { %2146 = vset.pattern.permute.xlu0 %v2194_v6  ;;  %2148 = vset.pattern.permute.xlu1 %v2194_v6  ;;  %v534_v6 = vld [vmem:[%s2569_s1] sm:$0xff] }
  0x20   : > { %305 = vperm.xlu0 %2146, %v2284_v3   ;;  %301 = vperm.xlu1 %2148, %v2287_v4   ;;  %v410_v27 = vand.u32 4294901760, %v409_v26 }
  0x22   : > { %411 = vmatpush.msra.mxu1 %v410_v27  ;;  %2112 = vmatpush.msra.mxu3 %v410_v27 }
  0x24   : > { %524 = vmatpush.msrb.mxu1 %v372_v23  ;;  %466 = vmatpush.msrb.mxu3 %v372_v23 }
  0x28   : > { %2150 = vset.pattern.permute.xlu0 %v2193_v5 }
  0x89   : > { %v296_v7 = vpop.permute.xlu0 %295  ;;  %v291_v8 = vpop.permute.xlu1 %290 }
  0x8a   : > { %v299_v10 = vadd.f32 %v296_v7, %v287_v9  ;;  %v298_v14 = vadd.f32 %v291_v8, %v286_v12  ;;  %v546_v7 = vsel %vm544_vm3, %v534_v6, 0 }
  0x8b   : > { %v2348_v8 = vand.u32 4294901760, %v546_v7 }
  0x8d   : > { %v570_v12 = vsub.f32 %v546_v7, %v2348_v8 }
  0x92   : > { %v306_v11 = vpop.permute.xlu0 %305  ;;  %v302_v15 = vpop.permute.xlu1 %301 }
  0x93   : > { %v2303_v13 = vmul.f32 %v306_v11, %v299_v10  ;;  %v2307_v16 = vmul.f32 %v302_v15, %v298_v14  ;;  %v535_v10 = vld [vmem:[%s2569_s1 + $0x8] sm:$0xff] }
  0x94   : > { %v549_v15 = vsel %vm544_vm3, %v535_v10, 0 }
  0x95   : > { %314 = vrot.lane.b32.xlu2 %v2303_v13, %s2195_s25  ;;  %v2360_v23 = vand.u32 4294901760, %v549_v15 }
  0x97   : > { %v578_v27 = vsub.f32 %v549_v15, %v2360_v23 }
  0x9d   : > { %312 = vrot.lane.b32.xlu2 %v2307_v16, %s2195_s25 }
  0xef   : > { %v315_v17 = vpop.permute.xlu2 %314 }
  0xf0   : > { %v2312_v18 = vmul.f32 %v315_v17, %v2284_v3 }
  0xf2   : > { %346 = vrot.lane.b32.xlu1 %v2312_v18, %s2196_s26 }
  0xf7   : > { %v313_v19 = vpop.permute.xlu2 %312 }
  0xf8   : > { %v2317_v20 = vmul.f32 %v313_v19, %v2287_v4  ;;  %v571_v19 = vand.u32 4294901760, %v570_v12 }
  0xfa   : > { %344 = vrot.lane.b32.xlu2 %v2317_v20, %s2196_s26  ;;  %v572_v25 = vsub.f32 %v570_v12, %v571_v19 }
 0x154   : > { %v345_v28 = vpop.permute.xlu2 %344 }
 0x155   : > { %v349_v29 = vsel %vm348_vm2, %v345_v28, 0  ;;  %v2101_v28 = vld [vmem:[%s2569_s1 + $0x10] sm:$0xff] }
 0x156   : > { %v374_v30 = vand.u32 4294901760, %v349_v29 }
 0x158   : > { %v375_v31 = vsub.f32 %v349_v29, %v374_v30  ;;  %413 = vmatmul.f32.vlgmr.msra.gmra.mxu1 %v374_v30 }
 0x15a   : > { %v376_v32 = vand.u32 4294901760, %v375_v31 }
 0x15c   : > { %v377_v33 = vsub.f32 %v375_v31, %v376_v32 }
 0x15e   : > { %v378_v34 = vand.u32 4294901760, %v377_v33  ;;  %v753_v33 = vsel %vm544_vm3, %v2101_v28, 0  ;;  %v2103_v28 = vld [vmem:[%s2569_s1 + $0x20] sm:$0xff] }
 0x160   : > { %379 = vmatmul.f32.vlgmr.msra.gmra.mxu0 %v378_v34  ;;  %526 = vmatmul.f32.vlgmr.msrb.gmra.mxu1 %v374_v30 }
 0x164   : > { %v347_v35 = vpop.permute.xlu1 %346 }
 0x165   : > { %v351_v36 = vsel %vm348_vm2, %v347_v35, 0 }
 0x166   : > { %v382_v37 = vand.u32 4294901760, %v351_v36 }
 0x168   : > { %v383_v38 = vsub.f32 %v351_v36, %v382_v37  ;;  %417 = vmatmul.f32.vlgmr.msra.gmra.mxu3 %v382_v37  ;;  %500 = vmatmul.f32.vlgmr.msrb.gmra.mxu0 %v374_v30  ;;  %v579_v36 = vand.u32 4294901760, %v578_v27 }
 0x169   : > { %530 = vmatmul.f32.gmra.mxu1 %v382_v37 }
 0x16a   : > { %v384_v39 = vand.u32 4294901760, %v383_v38 }
 0x16c   : > { %v385_v40 = vsub.f32 %v383_v38, %v384_v39 }
 0x16e   : > { %v386_v41 = vand.u32 4294901760, %v385_v40 }
 0x170   : > { %387 = vmatmul.f32.vlgmr.msra.gmra.mxu2 %v386_v41  ;;  %470 = vmatmul.f32.vlgmr.msrb.gmra.mxu3 %v376_v32  ;;  %v573_v32 = vand.u32 4294901760, %v572_v25 }
 0x171   : > { %504 = vmatmul.f32.gmra.mxu0 %v382_v37 }
 0x178   : > { %441 = vmatmul.f32.vlgmr.msrb.gmra.mxu2 %v375_v31  ;;  %476 = vmatmul.f32.gmra.mxu3 %v384_v39 }
 0x180   : > { %446 = vmatmul.f32.gmra.mxu2 %v383_v38  ;;  %v2369_v38 = vand.u32 4294901760, %v753_v33 }
 0x1d5   : > { %v414_v46 = vpop.f32.mrf.mxu1 }
 0x1dd   : > { %v380_v44 = vpop.f32.mrf.mxu0  ;;  %v527_v55 = vpop.f32.mrf.mxu1 }
 0x1de   : > { %v381_v47 = vadd.f32 %v2328_v43, %v380_v44  ;;  %v2102_v44 = vld [vmem:[%s2569_s1 + $0x18] sm:$0xff] }
 0x1e0   : > { %v415_v48 = vadd.f32 %v414_v46, %v381_v47 }
 0x1e5   : > { %v501_v52 = vpop.f32.mrf.mxu0 }
 0x1e6   : > { %v531_v1 = vpop.f32.mrf.mxu1 }
 0x1eb   : > { %v418_v42 = vpop.f32.mrf.mxu3 }
 0x1ee   : > { %v505_v63 = vpop.f32.mrf.mxu0 }
 0x1f3   : > { %v388_v45 = vpop.f32.mrf.mxu2  ;;  %v471_v49 = vpop.f32.mrf.mxu3 }
 0x1f4   : > { %v389_v53 = vadd.f32 %v2328_v43, %v388_v45 }
 0x1f6   : > { %v419_v58 = vadd.f32 %v418_v42, %v389_v53  ;;  %v580_v42 = vsub.f32 %v578_v27, %v579_v36 }
 0x1f8   : > { %v581_v53 = vand.u32 4294901760, %v580_v42 }
 0x1fb   : > { %v442_v50 = vpop.f32.mrf.mxu2  ;;  %v477_v61 = vpop.f32.mrf.mxu3 }
 0x1fc   : > { %v443_v51 = vadd.f32 %v442_v50, %v415_v48  ;;  %v2376_v48 = vsub.f32 %v753_v33, %v2369_v38 }
 0x1fe   : > { %v472_v54 = vadd.f32 %v471_v49, %v443_v51  ;;  %v756_v49 = vsel %vm544_vm3, %v2102_v44, 0 }
 0x200   : > { %v502_v56 = vadd.f32 %v501_v52, %v472_v54 }
 0x202   : > { %v2332_v57 = vadd.f32 %v527_v55, %v502_v56  ;;  %v778_v56 = vand.u32 4294901760, %v2376_v48 }
 0x203   : > { %v447_v59 = vpop.f32.mrf.mxu2 }
 0x204   : > { %v448_v60 = vadd.f32 %v447_v59, %v419_v58  ;;  %538 = vrot.lane.b32.xlu1 %v2332_v57, %s2197_s28  ;;  %v2381_v58 = vand.u32 4294901760, %v756_v49 }
 0x206   : > { %v478_v62 = vadd.f32 %v477_v61, %v448_v60 }
 0x208   : > { %v506_v0 = vadd.f32 %v505_v63, %v478_v62  ;;  %v779_v63 = vsub.f32 %v2376_v48, %v778_v56 }
 0x20a   : > { %v2335_v2 = vadd.f32 %v531_v1, %v506_v0  ;;  %v2392_v0 = vsub.f32 %v756_v49, %v2381_v58 }
 0x20c   : > { %955 = vrot.lane.b32.xlu1 %v2335_v2, %s2198_s29  ;;  %748 = vrot.lane.b32.xlu2 %v2335_v2, %s2199_s7  ;;  %v786_v10 = vand.u32 4294901760, %v2392_v0 }
 0x20d   : > { %540 = vrot.lane.b32.xlu0 %v2335_v2, %s2197_s28 }
 0x214   : > { %1160 = vrot.lane.b32.xlu1 %v2332_v57, %s2200_s8  ;;  %953 = vrot.lane.b32.xlu2 %v2332_v57, %s2198_s29 }
 0x215   : > { %746 = vrot.lane.b32.xlu0 %v2332_v57, %s2199_s7  ;;  %s2203_s7 = smov 48  }
 0x21d   : > { %1162 = vrot.lane.b32.xlu0 %v2335_v2, %s2200_s8 }
 0x266   : > { %v749_v9 = vpop.permute.xlu2 %748 }
 0x267   : > { %v2353_v11 = vand.u32 4294901760, %v749_v9 }
 0x269   : > { %v808_v17 = vsub.f32 %v749_v9, %v2353_v11  ;;  %v780_v9 = vand.u32 4294901760, %v779_v63 }
 0x26b   : > { %v809_v24 = vand.u32 4294901760, %v808_v17 }
 0x26d   : > { %v810_v31 = vsub.f32 %v808_v17, %v809_v24 }
 0x26e   : > { %v954_v54 = vpop.permute.xlu2 %953 }
 0x26f   : > { %v811_v39 = vand.u32 4294901760, %v810_v31  ;;  %v2386_v61 = vand.u32 4294901760, %v954_v54 }
 0x271   : > { %v1021_v7 = vsub.f32 %v954_v54, %v2386_v61 }
 0x276   : > { %v539_v14 = vpop.permute.xlu1 %538 }
 0x277   : > { %v2358_v22 = vand.u32 4294901760, %v539_v14 }
 0x279   : > { %v607_v26 = vsub.f32 %v539_v14, %v2358_v22 }
 0x27b   : > { %v608_v35 = vand.u32 4294901760, %v607_v26 }
 0x27d   : > { %v609_v41 = vsub.f32 %v607_v26, %v608_v35 }
 0x27e   : > { %v956_v50 = vpop.permute.xlu1 %955 }
 0x27f   : > { %v541_v29 = vpop.permute.xlu0 %540  ;;  %v610_v52 = vand.u32 4294901760, %v609_v41  ;;  %v2383_v59 = vand.u32 4294901760, %v956_v50 }
 0x280   : > { %v565_v30 = vand.u32 4294901760, %v541_v29 }
 0x281   : > { %v1015_v1 = vsub.f32 %v956_v50, %v2383_v59 }
 0x282   : > { %v601_v34 = vsub.f32 %v541_v29, %v565_v30  ;;  %566 = vmatpush.msra.mxu2 %v565_v30  ;;  %667 = vmatpush.msra.mxu1 %v565_v30 }
 0x284   : > { %v602_v37 = vand.u32 4294901760, %v601_v34  ;;  %568 = vmatpush.msra.mxu2 %v2358_v22  ;;  %637 = vmatpush.msra.mxu0 %v601_v34 }
 0x285   : > { %669 = vmatpush.msra.mxu1 %v2358_v22  ;;  %574 = vmatmul.f32.vlgmr.msra.gmra.mxu2 %v573_v32  ;;  %v960_v32 = vsel %vm544_vm3, %v2103_v28, 0 }
 0x286   : > { %v603_v40 = vsub.f32 %v601_v34, %v602_v37  ;;  %673 = vmatmul.f32.vlgmr.msra.gmra.mxu1 %v571_v19  ;;  %640 = vmatpush.msra.mxu0 %v607_v26  ;;  %v1161_v14 = vpop.permute.xlu1 %1160  ;;  %v787_v19 = vsub.f32 %v2392_v0, %v786_v10 }
 0x287   : > { %812 = vmatpush.msrb.mxu1 %v811_v39  ;;  %700 = vmatpush.msrb.mxu2 %v602_v37  ;;  %v747_v45 = vpop.permute.xlu0 %746 }
 0x288   : > { %v604_v46 = vand.u32 4294901760, %v603_v40  ;;  %643 = vmatmul.f32.vlgmr.msra.gmra.mxu0 %v570_v12  ;;  %v774_v47 = vand.u32 4294901760, %v747_v45  ;;  %v1016_v12 = vand.u32 4294901760, %v1015_v1 }
 0x289   : > { %773 = vmatpush.msrb.mxu0 %v2353_v11  ;;  %704 = vmatpush.msrb.mxu2 %v608_v35  ;;  %v2427_v35 = vand.u32 4294901760, %v960_v32 }
 0x28a   : > { %v814_v51 = vsub.f32 %v747_v45, %v774_v47  ;;  %605 = vmatpush.msra.mxu3 %v604_v46 }
 0x28b   : > { %844 = vmatpush.msra.mxu2 %v808_v17  ;;  %775 = vmatpush.msrb.mxu0 %v774_v47  ;;  %v1022_v17 = vand.u32 4294901760, %v1021_v7  ;;  %v984_v39 = vsub.f32 %v960_v32, %v2427_v35 }
 0x28c   : > { %611 = vmatpush.msra.mxu3 %v610_v52  ;;  %v815_v55 = vand.u32 4294901760, %v814_v51 }
 0x28d   : > { %907 = vmatpush.msra.mxu0 %v809_v24  ;;  %847 = vmatpush.msra.mxu2 %v814_v51  ;;  %v1023_v25 = vsub.f32 %v1021_v7, %v1022_v17  ;;  %v985_v42 = vand.u32 4294901760, %v984_v39 }
 0x28e   : > { %613 = vmatmul.f32.vlgmr.msra.gmra.mxu3 %v2348_v8  ;;  %582 = vmatmul.f32.gmra.mxu2 %v581_v53  ;;  %v816_v60 = vsub.f32 %v814_v51, %v815_v55  ;;  %v2106_v51 = vld [vmem:[%s2569_s1 + $0x38] sm:$0xff] }
 0x28f   : > { %679 = vmatmul.f32.gmra.mxu1 %v579_v36  ;;  %729 = vmatpush.msrb.mxu3 %v565_v30  ;;  %v1163_v6 = vpop.permute.xlu0 %1162  ;;  %v1024_v31 = vand.u32 4294901760, %v1023_v25  ;;  %v1170_v53 = vsel %vm544_vm3, %v2106_v51, 0 }
 0x290   : > { %911 = vmatpush.msra.mxu0 %v815_v55  ;;  %v817_v62 = vand.u32 4294901760, %v816_v60  ;;  %v2400_v15 = vand.u32 4294901760, %v1163_v6 }
 0x291   : > { %648 = vmatmul.f32.gmra.mxu0 %v578_v27  ;;  %731 = vmatpush.msrb.mxu3 %v2358_v22  ;;  %v1017_v22 = vsub.f32 %v1015_v1, %v1016_v12  ;;  %v788_v27 = vand.u32 4294901760, %v787_v19 }
 0x292   : > { %818 = vmatpush.msrb.mxu1 %v817_v62  ;;  %v2413_v24 = vsub.f32 %v1163_v6, %v2400_v15 }
 0x293   : > { %874 = vmatpush.msra.mxu3 %v2353_v11  ;;  %v1018_v29 = vand.u32 4294901760, %v1017_v22 }
 0x294   : > { %936 = vmatpush.msra.mxu1 %v2353_v11  ;;  %v2407_v11 = vand.u32 4294901760, %v1161_v14  ;;  %v1223_v30 = vand.u32 4294901760, %v2413_v24 }
 0x295   : > { %876 = vmatpush.msra.mxu3 %v774_v47 }
 0x296   : > { %617 = vmatmul.f32.gmra.mxu3 %v2360_v23  ;;  %938 = vmatpush.msra.mxu1 %v774_v47  ;;  %v1228_v26 = vsub.f32 %v1161_v14, %v2407_v11  ;;  %v1224_v34 = vsub.f32 %v2413_v24, %v1223_v30 }
 0x297   : > { %706 = vmatmul.f32.vlgmr.msrb.gmra.mxu2 %v2348_v8  ;;  %820 = vmatmul.f32.vlgmr.msrb.gmra.mxu1 %v2369_v38 }
 0x298   : > { %980 = vmatpush.msrb.mxu2 %v2383_v59  ;;  %1081 = vmatpush.msrb.mxu1 %v2383_v59  ;;  %v1229_v33 = vand.u32 4294901760, %v1228_v26  ;;  %v1225_v37 = vand.u32 4294901760, %v1224_v34 }
 0x299   : > { %781 = vmatmul.f32.vlgmr.msrb.gmra.mxu0 %v780_v9 }
 0x29a   : > { %982 = vmatpush.msrb.mxu2 %v2386_v61  ;;  %1051 = vmatpush.msrb.mxu0 %v1015_v1  ;;  %v1230_v36 = vsub.f32 %v1228_v26, %v1229_v33 }
 0x29b   : > { %1083 = vmatpush.msrb.mxu1 %v2386_v61 }
 0x29c   : > { %1054 = vmatpush.msrb.mxu0 %v1021_v7  ;;  %v1231_v41 = vand.u32 4294901760, %v1230_v36 }
 0x29e   : > { %733 = vmatmul.f32.vlgmr.msrb.gmra.mxu3 %v2348_v8  ;;  %v2104_v8 = vld [vmem:[%s2569_s1 + $0x28] sm:$0xff] }
 0x29f   : > { %710 = vmatmul.f32.gmra.mxu2 %v2360_v23  ;;  %824 = vmatmul.f32.gmra.mxu1 %v2381_v58  ;;  %v963_v40 = vsel %vm544_vm3, %v2104_v8, 0 }
 0x2a0   : > { %1019 = vmatpush.msrb.mxu3 %v1018_v29  ;;  %v991_v44 = vand.u32 4294901760, %v963_v40 }
 0x2a1   : > { %789 = vmatmul.f32.gmra.mxu0 %v788_v27 }
 0x2a2   : > { %1025 = vmatpush.msrb.mxu3 %v1024_v31  ;;  %v992_v45 = vsub.f32 %v963_v40, %v991_v44 }
 0x2a6   : > { %737 = vmatmul.f32.gmra.mxu3 %v2360_v23  ;;  %v986_v23 = vsub.f32 %v984_v39, %v985_v42 }
 0x2a7   : > { %850 = vmatmul.f32.vlgmr.msra.gmra.mxu2 %v2376_v48  ;;  %940 = vmatmul.f32.vlgmr.msra.gmra.mxu1 %v2369_v38  ;;  %v993_v48 = vand.u32 4294901760, %v992_v45 }
 0x2a8   : > { %1114 = vmatpush.msra.mxu2 %v1016_v12  ;;  %1226 = vmatpush.msra.mxu1 %v1225_v37  ;;  %v987_v47 = vand.u32 4294901760, %v986_v23 }
 0x2a9   : > { %913 = vmatmul.f32.vlgmr.msra.gmra.mxu0 %v2369_v38  ;;  %v2105_v38 = vld [vmem:[%s2569_s1 + $0x30] sm:$0xff]  ;;  %v994_v50 = vsub.f32 %v992_v45, %v993_v48 }
 0x2aa   : > { %1118 = vmatpush.msra.mxu2 %v1022_v17  ;;  %1187 = vmatpush.msra.mxu0 %v2400_v15  ;;  %v1167_v46 = vsel %vm544_vm3, %v2105_v38, 0 }
 0x2ab   : > { %1232 = vmatpush.msra.mxu1 %v1231_v41  ;;  %v1190_v49 = vand.u32 4294901760, %v1167_v46  ;;  %v995_v54 = vand.u32 4294901760, %v994_v50 }
 0x2ac   : > { %1189 = vmatpush.msra.mxu0 %v2407_v11 }
 0x2ad   : > { %v1191_v52 = vsub.f32 %v1167_v46, %v1190_v49 }
 0x2ae   : > { %880 = vmatmul.f32.vlgmr.msra.gmra.mxu3 %v778_v56  ;;  %v1198_v56 = vand.u32 4294901760, %v1170_v53 }
 0x2af   : > { %855 = vmatmul.f32.gmra.mxu2 %v2392_v0  ;;  %944 = vmatmul.f32.gmra.mxu1 %v2381_v58  ;;  %v1192_v55 = vand.u32 4294901760, %v1191_v52 }
 0x2b0   : > { %1143 = vmatpush.msra.mxu3 %v2383_v59  ;;  %v1199_v59 = vsub.f32 %v1170_v53, %v1198_v56 }
 0x2b1   : > { %917 = vmatmul.f32.gmra.mxu0 %v2381_v58  ;;  %v1193_v58 = vsub.f32 %v1191_v52, %v1192_v55 }
 0x2b2   : > { %1145 = vmatpush.msra.mxu3 %v2386_v61  ;;  %v1200_v61 = vand.u32 4294901760, %v1199_v59 }
 0x2b3   : > { %v1194_v60 = vand.u32 4294901760, %v1193_v58 }
 0x2b4   : > { %v1201_v62 = vsub.f32 %v1199_v59, %v1200_v61 }
 0x2b6   : > { %886 = vmatmul.f32.gmra.mxu3 %v786_v10  ;;  %v1202_v63 = vand.u32 4294901760, %v1201_v62 }
 0x2b7   : > { %988 = vmatmul.f32.vlgmr.msrb.gmra.mxu2 %v987_v47  ;;  %1087 = vmatmul.f32.vlgmr.msrb.gmra.mxu1 %v985_v42 }
 0x2b8   : > { %1258 = vmatpush.msrb.mxu2 %v2413_v24  ;;  %1350 = vmatpush.msrb.mxu1 %v2400_v15 }
 0x2b9   : > { %1057 = vmatmul.f32.vlgmr.msrb.gmra.mxu0 %v984_v39 }
 0x2ba   : > { %1261 = vmatpush.msrb.mxu2 %v1228_v26  ;;  %1321 = vmatpush.msrb.mxu0 %v1223_v30 }
 0x2bb   : > { %1352 = vmatpush.msrb.mxu1 %v2407_v11 }
 0x2bc   : > { %1325 = vmatpush.msrb.mxu0 %v1229_v33 }
 0x2be   : > { %1027 = vmatmul.f32.vlgmr.msrb.gmra.mxu3 %v2427_v35 }
 0x2bf   : > { %1288 = vmatpush.msrb.mxu3 %v2400_v15  ;;  %996 = vmatmul.f32.gmra.mxu2 %v995_v54 }
 0x2c0   : > { %1093 = vmatmul.f32.gmra.mxu1 %v993_v48 }
 0x2c1   : > { %1290 = vmatpush.msrb.mxu3 %v2407_v11  ;;  %1062 = vmatmul.f32.gmra.mxu0 %v992_v45 }
 0x2c6   : > { %1031 = vmatmul.f32.gmra.mxu3 %v991_v44 }
 0x2c7   : > { %1120 = vmatmul.f32.vlgmr.msra.gmra.mxu2 %v2427_v35 }
 0x2c8   : > { %1234 = vmatmul.f32.vlgmr.msra.gmra.mxu1 %v1190_v49 }
 0x2c9   : > { %1195 = vmatmul.f32.vlgmr.msra.gmra.mxu0 %v1194_v60 }
 0x2ce   : > { %1147 = vmatmul.f32.vlgmr.msra.gmra.mxu3 %v2427_v35 }
 0x2cf   : > { %1124 = vmatmul.f32.gmra.mxu2 %v991_v44 }
 0x2d0   : > { %1238 = vmatmul.f32.gmra.mxu1 %v1198_v56 }
 0x2d1   : > { %1203 = vmatmul.f32.gmra.mxu0 %v1202_v63 }
 0x2d6   : > { %1151 = vmatmul.f32.gmra.mxu3 %v991_v44 }
 0x2d7   : > { %1264 = vmatmul.f32.vlgmr.msrb.gmra.mxu2 %v1191_v52 }
 0x2d8   : > { %1354 = vmatmul.f32.vlgmr.msrb.gmra.mxu1 %v1190_v49 }
 0x2d9   : > { %1327 = vmatmul.f32.vlgmr.msrb.gmra.mxu0 %v1190_v49 }
 0x2de   : > { %1294 = vmatmul.f32.vlgmr.msrb.gmra.mxu3 %v1192_v55 }
 0x2df   : > { %1269 = vmatmul.f32.gmra.mxu2 %v1199_v59 }
 0x2e0   : > { %1358 = vmatmul.f32.gmra.mxu1 %v1198_v56 }
 0x2e1   : > { %1331 = vmatmul.f32.gmra.mxu0 %v1198_v56 }
 0x2e6   : > { %1300 = vmatmul.f32.gmra.mxu3 %v1200_v61 }
 0x303   : > { %v674_v0 = vpop.f32.mrf.mxu1 }
 0x305   : > { %v644_v1 = vpop.f32.mrf.mxu0 }
 0x308   : > { %v575_v6 = vpop.f32.mrf.mxu2 }
 0x30c   : > { %v680_v7 = vpop.f32.mrf.mxu1 }
 0x30e   : > { %v649_v9 = vpop.f32.mrf.mxu0 }
 0x311   : > { %v614_v10 = vpop.f32.mrf.mxu3  ;;  %v583_v14 = vpop.f32.mrf.mxu2 }
 0x312   : > { %v615_v12 = vadd.f32 %v614_v10, %v575_v6 }
 0x314   : > { %v645_v15 = vadd.f32 %v644_v1, %v615_v12  ;;  %v821_v17 = vpop.f32.mrf.mxu1 }
 0x316   : > { %v675_v11 = vadd.f32 %v674_v0, %v645_v15  ;;  %v782_v19 = vpop.f32.mrf.mxu0 }
 0x317   : > { %v822_v53 = vadd.f32 %v821_v17, %v782_v19 }
 0x319   : > { %v618_v22 = vpop.f32.mrf.mxu3 }
 0x31a   : > { %v619_v24 = vadd.f32 %v618_v22, %v583_v14  ;;  %v707_v25 = vpop.f32.mrf.mxu2 }
 0x31b   : > { %v708_v62 = vadd.f32 %v707_v25, %v675_v11 }
 0x31c   : > { %v650_v26 = vadd.f32 %v649_v9, %v619_v24  ;;  %v825_v27 = vpop.f32.mrf.mxu1 }
 0x31e   : > { %v681_v28 = vadd.f32 %v680_v7, %v650_v26  ;;  %v790_v29 = vpop.f32.mrf.mxu0 }
 0x31f   : > { %v826_v0 = vadd.f32 %v825_v27, %v790_v29 }
 0x321   : > { %v734_v30 = vpop.f32.mrf.mxu3 }
 0x322   : > { %v711_v31 = vpop.f32.mrf.mxu2  ;;  %v735_v6 = vadd.f32 %v734_v30, %v708_v62  ;;  %v2483_v62 = vld [vmem:[%s2266_s9 + $0x8] sm:$0xff] }
 0x323   : > { %v712_v25 = vadd.f32 %v711_v31, %v681_v28 }
 0x324   : > { %v941_v33 = vpop.f32.mrf.mxu1 }
 0x326   : > { %v914_v32 = vpop.f32.mrf.mxu0 }
 0x329   : > { %v738_v34 = vpop.f32.mrf.mxu3 }
 0x32a   : > { %v851_v35 = vpop.f32.mrf.mxu2 }
 0x32b   : > { %v852_v55 = vadd.f32 %v851_v35, %v822_v53  ;;  %v741_v35 = vadd.f32 %v735_v6, %v2332_v57 }
 0x32c   : > { %v945_v37 = vpop.f32.mrf.mxu1 }
 0x32e   : > { %v918_v36 = vpop.f32.mrf.mxu0 }
 0x331   : > { %v881_v8 = vpop.f32.mrf.mxu3 }
 0x332   : > { %v856_v39 = vpop.f32.mrf.mxu2  ;;  %v882_v58 = vadd.f32 %v881_v8, %v852_v55 }
 0x333   : > { %v857_v7 = vadd.f32 %v856_v39, %v826_v0 }
 0x334   : > { %v1088_v44 = vpop.f32.mrf.mxu1  ;;  %v915_v1 = vadd.f32 %v914_v32, %v882_v58  ;;  %v739_v32 = vadd.f32 %v738_v34, %v712_v25  ;;  %v2201_v58 = vmov 32.0  }
 0x335   : > { %2160 = vrcp.f32 %v2201_v58 }
 0x336   : > { %v1058_v40 = vpop.f32.mrf.mxu0  ;;  %v942_v15 = vadd.f32 %v941_v33, %v915_v1  ;;  %v742_v57 = vadd.f32 %v739_v32, %v2335_v2 }
 0x338   : > { %v948_v27 = vadd.f32 %v942_v15, %v741_v35 }
 0x339   : > { %v887_v41 = vpop.f32.mrf.mxu3 }
 0x33a   : > { %v989_v42 = vpop.f32.mrf.mxu2  ;;  %v888_v22 = vadd.f32 %v887_v41, %v857_v7 }
 0x33c   : > { %v919_v29 = vadd.f32 %v918_v36, %v888_v22 }
 0x33d   : > { %v1094_v46 = vpop.f32.mrf.mxu1 }
 0x33e   : > { %v1063_v45 = vpop.f32.mrf.mxu0  ;;  %v946_v41 = vadd.f32 %v945_v37, %v919_v29 }
 0x341   : > { %v1028_v23 = vpop.f32.mrf.mxu3 }
 0x342   : > { %v997_v38 = vpop.f32.mrf.mxu2  ;;  %v1029_v56 = vadd.f32 %v1028_v23, %v989_v42 }
 0x344   : > { %v1059_v61 = vadd.f32 %v1058_v40, %v1029_v56 }
 0x345   : > { %v1235_v50 = vpop.f32.mrf.mxu1 }
 0x346   : > { %v1196_v49 = vpop.f32.mrf.mxu0  ;;  %v1089_v9 = vadd.f32 %v1088_v44, %v1059_v61 }
 0x347   : > { %v1236_v12 = vadd.f32 %v1235_v50, %v1196_v49 }
 0x349   : > { %v1032_v47 = vpop.f32.mrf.mxu3 }
 0x34a   : > { %v1121_v48 = vpop.f32.mrf.mxu2  ;;  %v1033_v10 = vadd.f32 %v1032_v47, %v997_v38 }
 0x34b   : > { %v1122_v17 = vadd.f32 %v1121_v48, %v1089_v9 }
 0x34c   : > { %v1064_v8 = vadd.f32 %v1063_v45, %v1033_v10 }
 0x34d   : > { %v1239_v60 = vpop.f32.mrf.mxu1 }
 0x34e   : > { %v1204_v54 = vpop.f32.mrf.mxu0  ;;  %v1095_v42 = vadd.f32 %v1094_v46, %v1064_v8  ;;  %v949_v46 = vadd.f32 %v946_v41, %v742_v57 }
 0x34f   : > { %v1240_v23 = vadd.f32 %v1239_v60, %v1204_v54  ;;  %v2161_v60 = vpop.eup %2160 }
 0x350   : > { %v1383_v61 = vmul.f32 32.0, %v2161_v60  ;;  %vm1387_vm4 = vweird.f32 %v2161_v60 }
 0x351   : > { %v1148_v51 = vpop.f32.mrf.mxu3 }
 0x352   : > { %v1125_v52 = vpop.f32.mrf.mxu2  ;;  %v1149_v40 = vadd.f32 %v1148_v51, %v1122_v17 }
 0x353   : > { %v1126_v38 = vadd.f32 %v1125_v52, %v1095_v42 }
 0x354   : > { %v1155_v44 = vadd.f32 %v1149_v40, %v948_v27 }
 0x355   : > { %v1355_v26 = vpop.f32.mrf.mxu1 }
 0x356   : > { %v1328_v14 = vpop.f32.mrf.mxu0 }
 0x359   : > { %v1152_v59 = vpop.f32.mrf.mxu3 }
 0x35a   : > { %v1265_v63 = vpop.f32.mrf.mxu2  ;;  %v1153_v50 = vadd.f32 %v1152_v59, %v1126_v38  ;;  %v2202_v59 = vmov 2  }
 0x35b   : > { %v1266_v19 = vadd.f32 %v1265_v63, %v1236_v12  ;;  %2151 = vset.pattern.permute.xlu1 %v2202_v59  ;;  %v1384_v63 = vsub.f32 1.0, %v1383_v61 }
 0x35c   : > { %v1156_v52 = vadd.f32 %v1153_v50, %v949_v46 }
 0x35d   : > { %v1359_v36 = vpop.f32.mrf.mxu1  ;;  %v1385_v0 = vmul.f32 %v2161_v60, %v1384_v63 }
 0x35e   : > { %v1332_v49 = vpop.f32.mrf.mxu0 }
 0x35f   : > { %v1386_v6 = vadd.f32 %v2161_v60, %v1385_v0 }
 0x361   : > { %v1295_v24 = vpop.f32.mrf.mxu3  ;;  %v2489_v7 = vsel %vm1387_vm4, %v2161_v60, %v1386_v6 }
 0x362   : > { %v1296_v11 = vadd.f32 %v1295_v24, %v1266_v19  ;;  %v1270_v39 = vpop.f32.mrf.mxu2 }
 0x363   : > { %v1271_v48 = vadd.f32 %v1270_v39, %v1240_v23 }
 0x364   : > { %v1329_v30 = vadd.f32 %v1328_v14, %v1296_v11 }
 0x366   : > { %v1356_v33 = vadd.f32 %v1355_v26, %v1329_v30 }
 0x368   : > { %v2466_v47 = vadd.f32 %v1356_v33, %v1155_v44 }
 0x369   : > { %v1301_v45 = vpop.f32.mrf.mxu3 }
 0x36a   : > { %v1302_v28 = vadd.f32 %v1301_v45, %v1271_v48  ;;  %v1364_v31 = vsel %vm544_vm3, %v2466_v47, 0.0  ;;  %v1370_v34 = vmul.f32 %v2466_v47, %v2466_v47 }
 0x36b   : > { %1365 = vadd.xlane.f32.xlu2 %v1364_v31 }
 0x36c   : > { %v1333_v37 = vadd.f32 %v1332_v49, %v1302_v28  ;;  %v1372_v51 = vsel %vm544_vm3, %v1370_v34, 0.0 }
 0x36d   : > { %1373 = vadd.xlane.f32.xlu1 %v1372_v51 }
 0x36e   : > { %v1360_v2 = vadd.f32 %v1359_v36, %v1333_v37 }
 0x370   : > { %v2474_v53 = vadd.f32 %v1360_v2, %v1156_v52 }
 0x372   : > { %v1367_v54 = vsel %vm544_vm3, %v2474_v53, 0.0  ;;  %v1371_v55 = vmul.f32 %v2474_v53, %v2474_v53 }
 0x373   : > { %1368 = vadd.xlane.f32.xlu0 %v1367_v54 }
 0x374   : > { %v1375_v56 = vsel %vm544_vm3, %v1371_v55, 0.0 }
 0x375   : > { %1376 = vadd.xlane.f32.xlu2 %v1375_v56 }
 0x386   : > { %1420 = vperm.xlu1 %2151, %v2287_v4  }
 0x38e   : > { %1444 = vrot.lane.b32.xlu1 %v2483_v62, %s2203_s7 }
 0x396   : > { %1442 = vrot.lane.b32.xlu1 %v2322_v21, %s2203_s7  ;;  %v2204_v21 = vmov 3  }
 0x3de   : > { %v1366_v1 = vpop.xlane.xlu2 %1365 }
 0x3e0   : > { %v1374_v12 = vpop.xlane.xlu1 %1373 }
 0x3e6   : > { %v1369_v9 = vpop.xlane.xlu0 %1368 }
 0x3e7   : > { %v1379_v10 = vadd.f32 %v1369_v9, %v1366_v1 }
 0x3e8   : > { %v1377_v14 = vpop.xlane.xlu2 %1376 }
 0x3e9   : > { %v1389_v15 = vmul.f32 %v2489_v7, %v1379_v10  ;;  %v1381_v22 = vadd.f32 %v1377_v14, %v1374_v12 }
 0x3eb   : > { %v1391_v17 = vmul.f32 %v1389_v15, %v1389_v15  ;;  %v1390_v19 = vmul.f32 %v2489_v7, %v1381_v22  ;;  %1407 = vperm.xlu2 %2149, %v1389_v15  }
 0x3ed   : > { %v1392_v24 = vsub.f32 %v1390_v19, %v1391_v17 }
 0x3ef   : > { %v1393_v26 = vmax.f32 %v1392_v24, 0.0 }
 0x3f1   : > { %v1394_v35 = vadd.f32 1e-05, %v1393_v26 }
 0x3f3   : > { %2162 = vrsqrt.f32 %v1394_v35  ;;  %2152 = vset.pattern.permute.xlu2 %v2204_v21  ;;  %vm1401_vm6 = vweird.f32 %v1394_v35 }
 0x3f4   : > { %1430 = vperm.xlu2 %2152, %v2287_v4  }
 0x3f8   : > { %v1421_v4 = vpop.permute.xlu1 %1420 }
 0x3f9   : > { %v2163_v8 = vpop.eup %2162 }
 0x3fa   : > { %v1396_v40 = vmul.f32 %v2163_v8, %v1394_v35  ;;  %vm1402_vm5 = vweird.f32 %v2163_v8 }
 0x3fb   : > { %vm1403_vm7 = vmor %vm1401_vm6, %vm1402_vm5 }
 0x3fc   : > { %v1397_v11 = vmul.f32 %v2163_v8, %v1396_v40  ;;  %2153 = vset.pattern.permute.xlu2 %v2202_v59 }
 0x3fd   : > { %1424 = vperm.xlu2 %2153, %v2284_v3  }
 0x3fe   : > { %v1398_v25 = vmul.f32 0.5, %v1397_v11 }
 0x400   : > { %v1399_v27 = vsub.f32 1.5, %v1398_v25  ;;  %v1445_v32 = vpop.permute.xlu1 %1444 }
 0x401   : > { %v1471_v39 = vand.u32 4294901760, %v1445_v32 }
 0x402   : > { %v1400_v29 = vmul.f32 %v2163_v8, %v1399_v27 }
 0x403   : > { %v1507_v42 = vsub.f32 %v1445_v32, %v1471_v39  ;;  %1472 = vmatpush.msra.mxu2 %v1471_v39  ;;  %1573 = vmatpush.msra.mxu1 %v1471_v39 }
 0x404   : > { %v1404_v30 = vsel %vm1403_vm7, %v2163_v8, %v1400_v29 }
 0x405   : > { %1414 = vperm.xlu0 %2150, %v1404_v30   ;;  %2154 = vset.pattern.permute.xlu2 %v2204_v21  ;;  %v1508_v44 = vand.u32 4294901760, %v1507_v42 }
 0x406   : > { %1434 = vperm.xlu2 %2154, %v2284_v3   ;;  %1543 = vmatpush.msra.mxu0 %v1507_v42 }
 0x407   : > { %v1509_v23 = vsub.f32 %v1507_v42, %v1508_v44 }
 0x408   : > { %v1443_v33 = vpop.permute.xlu1 %1442 }
 0x409   : > { %v1510_v41 = vand.u32 4294901760, %v1509_v23  ;;  %v1473_v38 = vand.u32 4294901760, %v1443_v33 }
 0x40b   : > { %v1513_v48 = vsub.f32 %v1443_v33, %v1473_v38  ;;  %1511 = vmatpush.msra.mxu3 %v1510_v41  ;;  %1474 = vmatpush.msra.mxu2 %v1473_v38 }
 0x40c   : > { %1575 = vmatpush.msra.mxu1 %v1473_v38 }
 0x40d   : > { %1448 = vrot.lane.b32.xlu0 %v2328_v43, %s2203_s7  ;;  %1606 = vmatpush.msrb.mxu2 %v1508_v44  ;;  %v1514_v3 = vand.u32 4294901760, %v1513_v48 }
 0x40e   : > { %2156 = vset.pattern.permute.xlu2 %v2193_v5  ;;  %1546 = vmatpush.msra.mxu0 %v1513_v48 }
 0x40f   : > { %v1515_v5 = vsub.f32 %v1513_v48, %v1514_v3  ;;  %1610 = vmatpush.msrb.mxu2 %v1514_v3 }
 0x411   : > { %v1516_v43 = vand.u32 4294901760, %v1515_v5 }
 0x413   : > { %1517 = vmatpush.msra.mxu3 %v1516_v43 }
 0x415   : > { %1635 = vmatpush.msrb.mxu3 %v1471_v39 }
 0x417   : > { %1637 = vmatpush.msrb.mxu3 %v1473_v38 }
 0x445   : > { %v1408_v57 = vpop.permute.xlu2 %1407 }
 0x446   : > { %v1410_v50 = vsub.f32 %v2466_v47, %v1408_v57  ;;  %v1411_v28 = vsub.f32 %v2474_v53, %v1408_v57  ;;  %v2205_v57 = vmov 4  }
 0x447   : > { %2155 = vset.pattern.permute.xlu1 %v2205_v57 }
 0x44e   : > { %v1431_v45 = vpop.permute.xlu2 %1430 }
 0x457   : > { %v1425_v49 = vpop.permute.xlu2 %1424 }
 0x460   : > { %v1435_v46 = vpop.permute.xlu2 %1434 }
 0x477   : > { %v1415_v31 = vpop.permute.xlu0 %1414 }
 0x478   : > { %v1417_v34 = vmul.f32 %v1415_v31, %v1410_v50  ;;  %v1418_v36 = vmul.f32 %v1415_v31, %v1411_v28  ;;  %v2522_v50 = vld [vmem:[%s2261_s30 + $0x8] sm:$0xff] }
 0x47a   : > { %v1427_v37 = vmul.f32 %v1421_v4, %v1417_v34  ;;  %v1428_v51 = vmul.f32 %v1425_v49, %v1418_v36 }
 0x47c   : > { %v1437_v52 = vadd.f32 %v1431_v45, %v1427_v37  ;;  %v1438_v2 = vadd.f32 %v1435_v46, %v1428_v51  ;;  %v2518_v45 = vld [vmem:[%s2261_s30] sm:$0xff]  ;;  %s2207_s30 = smov 32  }
 0x47e   : > { %v1439_v54 = vmax.f32 %v1437_v52, 0.0  ;;  %v1440_v55 = vmax.f32 %v1438_v2, 0.0  ;;  %v2206_v2 = vmov 5  }
 0x47f   : > { %v1449_v14 = vpop.permute.xlu0 %1448 }
 0x480   : > { %v1452_v56 = vsel %vm544_vm3, %v1439_v54, 0  ;;  %v1455_v58 = vsel %vm544_vm3, %v1440_v55, 0 }
 0x481   : > { %v1483_v59 = vand.u32 4294901760, %v1455_v58  ;;  %v1475_v60 = vand.u32 4294901760, %v1452_v56 }
 0x483   : > { %1519 = vmatmul.f32.vlgmr.msra.gmra.mxu3 %v1475_v60  ;;  %v1476_v47 = vsub.f32 %v1452_v56, %v1475_v60  ;;  %v1484_v61 = vsub.f32 %v1455_v58, %v1483_v59 }
 0x485   : > { %1549 = vmatmul.f32.vlgmr.msra.gmra.mxu0 %v1476_v47  ;;  %v1477_v53 = vand.u32 4294901760, %v1476_v47  ;;  %v1485_v1 = vand.u32 4294901760, %v1484_v61 }
 0x487   : > { %1579 = vmatmul.f32.vlgmr.msra.gmra.mxu1 %v1477_v53  ;;  %v1478_v63 = vsub.f32 %v1476_v47, %v1477_v53  ;;  %v1486_v6 = vsub.f32 %v1484_v61, %v1485_v1 }
 0x489   : > { %v1479_v0 = vand.u32 4294901760, %v1478_v63  ;;  %v1487_v9 = vand.u32 4294901760, %v1486_v6 }
 0x48b   : > { %1480 = vmatmul.f32.vlgmr.msra.gmra.mxu2 %v1479_v0  ;;  %1523 = vmatmul.f32.gmra.mxu3 %v1483_v59  ;;  %v2183_v0 = vld [vmem:[%s2256_s27] ss:$0 sm:$0xff]  ;;  %s2208_s27 = smov 127  }
 0x48d   : > { %1554 = vmatmul.f32.gmra.mxu0 %v1484_v61 }
 0x48f   : > { %1585 = vmatmul.f32.gmra.mxu1 %v1485_v1 }
 0x493   : > { %1488 = vmatmul.f32.gmra.mxu2 %v1487_v9  ;;  %1639 = vmatmul.f32.vlgmr.msrb.gmra.mxu3 %v1475_v60 }
 0x49b   : > { %1612 = vmatmul.f32.vlgmr.msrb.gmra.mxu2 %v1475_v60  ;;  %1643 = vmatmul.f32.gmra.mxu3 %v1483_v59  ;;  %v2182_v60 = vld [vmem:[%s2266_s9] sm:$0xff]  ;;  %s2209_s9 = smov 124  }
 0x4a3   : > { %1616 = vmatmul.f32.gmra.mxu2 %v1483_v59 }
 0x502   : > { %v1550_v19 = vpop.f32.mrf.mxu0 }
 0x504   : > { %v1580_v21 = vpop.f32.mrf.mxu1 }
 0x506   : > { %v1520_v10 = vpop.f32.mrf.mxu3 }
 0x50a   : > { %v1555_v29 = vpop.f32.mrf.mxu0 }
 0x50c   : > { %v1586_v42 = vpop.f32.mrf.mxu1 }
 0x50e   : > { %v1481_v12 = vpop.f32.mrf.mxu2  ;;  %v1524_v22 = vpop.f32.mrf.mxu3 }
 0x50f   : > { %v1482_v15 = vadd.f32 %v1481_v12, %v1449_v14 }
 0x511   : > { %v1521_v17 = vadd.f32 %v1520_v10, %v1482_v15 }
 0x513   : > { %v1551_v35 = vadd.f32 %v1550_v19, %v1521_v17 }
 0x515   : > { %v1581_v40 = vadd.f32 %v1580_v21, %v1551_v35 }
 0x516   : > { %v1489_v24 = vpop.f32.mrf.mxu2  ;;  %v1640_v11 = vpop.f32.mrf.mxu3 }
 0x517   : > { %v1490_v26 = vadd.f32 %v1489_v24, %v1449_v14 }
 0x519   : > { %v1525_v8 = vadd.f32 %v1524_v22, %v1490_v26 }
 0x51b   : > { %v1556_v4 = vadd.f32 %v1555_v29, %v1525_v8 }
 0x51d   : > { %v1587_v44 = vadd.f32 %v1586_v42, %v1556_v4 }
 0x51e   : > { %v1613_v25 = vpop.f32.mrf.mxu2  ;;  %v1644_v38 = vpop.f32.mrf.mxu3 }
 0x51f   : > { %v1614_v27 = vadd.f32 %v1613_v25, %v1581_v40 }
 0x521   : > { %v2503_v30 = vadd.f32 %v1640_v11, %v1614_v27 }
 0x523   : > { %v1647_v32 = vsel %vm544_vm3, %v2503_v30, 0.0  ;;  %v1653_v39 = vmul.f32 %v2503_v30, %v2503_v30 }
 0x524   : > { %1648 = vadd.xlane.f32.xlu1 %v1647_v32 }
 0x525   : > { %v1655_v23 = vsel %vm544_vm3, %v1653_v39, 0.0 }
 0x526   : > { %v1617_v33 = vpop.f32.mrf.mxu2  ;;  %1656 = vadd.xlane.f32.xlu0 %v1655_v23 }
 0x527   : > { %v1618_v41 = vadd.f32 %v1617_v33, %v1587_v44 }
 0x529   : > { %v2510_v48 = vadd.f32 %v1644_v38, %v1618_v41 }
 0x52b   : > { %v1650_v3 = vsel %vm544_vm3, %v2510_v48, 0.0  ;;  %v1654_v5 = vmul.f32 %v2510_v48, %v2510_v48 }
 0x52c   : > { %1651 = vadd.xlane.f32.xlu2 %v1650_v3 }
 0x52d   : > { %v1658_v43 = vsel %vm544_vm3, %v1654_v5, 0.0 }
 0x52e   : > { %1659 = vadd.xlane.f32.xlu1 %v1658_v43  ;;  %v320_v43 = vand.u32 2147483647, %v2518_v45 }
 0x547   : > { %1696 = vperm.xlu1 %2155, %v2518_v45  }
 0x54f   : > { %1700 = vperm.xlu1 %2155, %v2522_v50  }
 0x557   : > { %2158 = vset.pattern.permute.xlu1 %v2206_v2 }
 0x558   : > { %1710 = vperm.xlu1 %2158, %v2522_v50  }
 0x597   : > { %v1649_v49 = vpop.xlane.xlu1 %1648 }
 0x599   : > { %v1657_v34 = vpop.xlane.xlu0 %1656 }
 0x59f   : > { %v1652_v28 = vpop.xlane.xlu2 %1651 }
 0x5a0   : > { %v1662_v31 = vadd.f32 %v1652_v28, %v1649_v49 }
 0x5a1   : > { %v1660_v36 = vpop.xlane.xlu1 %1659 }
 0x5a2   : > { %v1665_v46 = vmul.f32 %v1662_v31, %v2489_v7  ;;  %v1664_v37 = vadd.f32 %v1660_v36, %v1657_v34 }
 0x5a4   : > { %v1667_v51 = vmul.f32 %v1665_v46, %v1665_v46  ;;  %v1666_v52 = vmul.f32 %v1664_v37, %v2489_v7  ;;  %1683 = vperm.xlu2 %2156, %v1665_v46  }
 0x5a6   : > { %v1668_v54 = vsub.f32 %v1666_v52, %v1667_v51 }
 0x5a8   : > { %v1669_v55 = vmax.f32 %v1668_v54, 0.0 }
 0x5aa   : > { %v1670_v56 = vadd.f32 1e-05, %v1669_v55 }
 0x5ac   : > { %2164 = vrsqrt.f32 %v1670_v56  ;;  %1719 = vrot.lane.b32.xlu2 %v2483_v62, %s2207_s30  ;;  %vm1677_vm9 = vweird.f32 %v1670_v56 }
 0x5ad   : > { %2166 = vlog2.f32 %v320_v43 }
 0x5b2   : > { %v2165_v58 = vpop.eup %2164 }
 0x5b3   : > { %v1672_v59 = vmul.f32 %v2165_v58, %v1670_v56  ;;  %vm1678_vm8 = vweird.f32 %v2165_v58  ;;  %v2167_v34 = vpop.eup %2166 }
 0x5b4   : > { %1717 = vrot.lane.b32.xlu2 %v2182_v60, %s2207_s30  ;;  %vm1679_vm10 = vmor %vm1677_vm9, %vm1678_vm8  ;;  %v322_v36 = vmul.f32 0.6931472, %v2167_v34 }
 0x5b5   : > { %v1673_v47 = vmul.f32 %v2165_v58, %v1672_v59 }
 0x5b7   : > { %v1674_v53 = vmul.f32 0.5, %v1673_v47 }
 0x5b9   : > { %v1675_v7 = vsub.f32 1.5, %v1674_v53  ;;  %v1697_v35 = vpop.permute.xlu1 %1696 }
 0x5bb   : > { %v1676_v61 = vmul.f32 %v2165_v58, %v1675_v7 }
 0x5bc   : > { %324 = vrot.lane.b32.xlu2 %v322_v36, %s2208_s27 }
 0x5bd   : > { %v1680_v63 = vsel %vm1679_vm10, %v2165_v58, %v1676_v61 }
 0x5be   : > { %1690 = vperm.xlu0 %2150, %v1680_v63  }
 0x5c1   : > { %v1701_v21 = vpop.permute.xlu1 %1700 }
 0x5c6   : > { %2157 = vset.pattern.permute.xlu0 %v2206_v2 }
 0x5c7   : > { %1706 = vperm.xlu0 %2157, %v2518_v45  }
 0x5ca   : > { %v1711_v27 = vpop.permute.xlu1 %1710 }
 0x5cf   : > { %1723 = vrot.lane.b32.xlu0 %v2183_v0, %s2207_s30 }
 0x5fe   : > { %v1684_v62 = vpop.permute.xlu2 %1683 }
 0x5ff   : > { %v1687_v8 = vsub.f32 %v2510_v48, %v1684_v62  ;;  %v1686_v25 = vsub.f32 %v2503_v30, %v1684_v62 }
 0x606   : > { %v1720_v1 = vpop.permute.xlu2 %1719 }
 0x607   : > { %v1746_v6 = vand.u32 4294901760, %v1720_v1 }
 0x609   : > { %v1782_v9 = vsub.f32 %v1720_v1, %v1746_v6  ;;  %1747 = vmatpush.msrb.mxu0 %v1746_v6  ;;  %1848 = vmatpush.msra.mxu3 %v1746_v6 }
 0x60b   : > { %v1783_v10 = vand.u32 4294901760, %v1782_v9  ;;  %1818 = vmatpush.msra.mxu2 %v1782_v9 }
 0x60d   : > { %v1784_v12 = vsub.f32 %v1782_v9, %v1783_v10 }
 0x60e   : > { %v1718_v15 = vpop.permute.xlu2 %1717 }
 0x60f   : > { %v1785_v14 = vand.u32 4294901760, %v1784_v12  ;;  %v1748_v22 = vand.u32 4294901760, %v1718_v15 }
 0x611   : > { %1786 = vmatpush.msrb.mxu1 %v1785_v14  ;;  %v1788_v17 = vsub.f32 %v1718_v15, %v1748_v22  ;;  %1749 = vmatpush.msrb.mxu0 %v1748_v22 }
 0x612   : > { %1850 = vmatpush.msra.mxu3 %v1748_v22 }
 0x613   : > { %1881 = vmatpush.msra.mxu0 %v1783_v10  ;;  %v1789_v19 = vand.u32 4294901760, %v1788_v17  ;;  %1821 = vmatpush.msra.mxu2 %v1788_v17 }
 0x615   : > { %v1790_v24 = vsub.f32 %v1788_v17, %v1789_v19  ;;  %1885 = vmatpush.msra.mxu0 %v1789_v19 }
 0x616   : > { %v325_v55 = vpop.permute.xlu2 %324 }
 0x617   : > { %v1791_v26 = vand.u32 4294901760, %v1790_v24  ;;  %v328_v58 = vsel %vm327_vm11, %v325_v55, 0.0 }
 0x618   : > { %329 = vadd.xlane.f32.xlu2 %v328_v58 }
 0x619   : > { %1792 = vmatpush.msrb.mxu1 %v1791_v26 }
 0x61b   : > { %1910 = vmatpush.msra.mxu1 %v1746_v6 }
 0x61d   : > { %1912 = vmatpush.msra.mxu1 %v1748_v22 }
 0x630   : > { %v1691_v40 = vpop.permute.xlu0 %1690 }
 0x631   : > { %v1694_v11 = vmul.f32 %v1691_v40, %v1687_v8  ;;  %v1693_v4 = vmul.f32 %v1691_v40, %v1686_v25 }
 0x633   : > { %v1704_v29 = vmul.f32 %v1701_v21, %v1694_v11  ;;  %v1703_v42 = vmul.f32 %v1697_v35, %v1693_v4 }
 0x635   : > { %v1714_v32 = vadd.f32 %v1711_v27, %v1704_v29 }
 0x637   : > { %v1716_v39 = vmax.f32 %v1714_v32, 0.0 }
 0x639   : > { %v1707_v44 = vpop.permute.xlu0 %1706  ;;  %v1730_v33 = vsel %vm544_vm3, %v1716_v39, 0 }
 0x63a   : > { %v1713_v23 = vadd.f32 %v1707_v44, %v1703_v42  ;;  %v1758_v3 = vand.u32 4294901760, %v1730_v33 }
 0x63c   : > { %v1715_v41 = vmax.f32 %v1713_v23, 0.0  ;;  %v1759_v57 = vsub.f32 %v1730_v33, %v1758_v3 }
 0x63e   : > { %v1727_v38 = vsel %vm544_vm3, %v1715_v41, 0  ;;  %v1760_v31 = vand.u32 4294901760, %v1759_v57 }
 0x63f   : > { %v1750_v5 = vand.u32 4294901760, %v1727_v38 }
 0x640   : > { %v1761_v46 = vsub.f32 %v1759_v57, %v1760_v31 }
 0x641   : > { %v1751_v48 = vsub.f32 %v1727_v38, %v1750_v5  ;;  %1794 = vmatmul.f32.vlgmr.msrb.gmra.mxu1 %v1750_v5  ;;  %v1724_v52 = vpop.permute.xlu0 %1723 }
 0x642   : > { %v1762_v37 = vand.u32 4294901760, %v1761_v46 }
 0x643   : > { %1824 = vmatmul.f32.vlgmr.msra.gmra.mxu2 %v1751_v48  ;;  %v1752_v30 = vand.u32 4294901760, %v1751_v48 }
 0x645   : > { %1854 = vmatmul.f32.vlgmr.msra.gmra.mxu3 %v1752_v30  ;;  %v1753_v49 = vsub.f32 %v1751_v48, %v1752_v30 }
 0x647   : > { %v1754_v28 = vand.u32 4294901760, %v1753_v49 }
 0x649   : > { %1755 = vmatmul.f32.vlgmr.msrb.gmra.mxu0 %v1754_v28  ;;  %1798 = vmatmul.f32.gmra.mxu1 %v1758_v3 }
 0x64b   : > { %1829 = vmatmul.f32.gmra.mxu2 %v1759_v57 }
 0x64d   : > { %1860 = vmatmul.f32.gmra.mxu3 %v1760_v31 }
 0x651   : > { %1763 = vmatmul.f32.gmra.mxu0 %v1762_v37  ;;  %1914 = vmatmul.f32.vlgmr.msra.gmra.mxu1 %v1750_v5 }
 0x659   : > { %1887 = vmatmul.f32.vlgmr.msra.gmra.mxu0 %v1750_v5  ;;  %1918 = vmatmul.f32.gmra.mxu1 %v1758_v3 }
 0x661   : > { %1891 = vmatmul.f32.gmra.mxu0 %v1758_v3 }
 0x6be   : > { %v1795_v51 = vpop.f32.mrf.mxu1 }
 0x6c6   : > { %v1756_v2 = vpop.f32.mrf.mxu0  ;;  %v1799_v56 = vpop.f32.mrf.mxu1 }
 0x6c7   : > { %v1757_v54 = vadd.f32 %v1756_v2, %v1724_v52  ;;  %v1825_v60 = vpop.f32.mrf.mxu2 }
 0x6c8   : > { %v1855_v61 = vpop.f32.mrf.mxu3 }
 0x6c9   : > { %v1796_v59 = vadd.f32 %v1795_v51, %v1757_v54 }
 0x6cb   : > { %v1826_v53 = vadd.f32 %v1825_v60, %v1796_v59 }
 0x6cd   : > { %v1856_v63 = vadd.f32 %v1855_v61, %v1826_v53  ;;  %v330_v53 = vpop.xlane.xlu2 %329 }
 0x6ce   : > { %v1764_v47 = vpop.f32.mrf.mxu0  ;;  %v1915_v62 = vpop.f32.mrf.mxu1 }
 0x6cf   : > { %v1765_v7 = vadd.f32 %v1764_v47, %v1724_v52  ;;  %v1830_v9 = vpop.f32.mrf.mxu2 }
 0x6d0   : > { %v1861_v15 = vpop.f32.mrf.mxu3 }
 0x6d1   : > { %v1800_v0 = vadd.f32 %v1799_v56, %v1765_v7  ;;  %v331_v7 = vrot.slane %v330_v53, 4 }
 0x6d3   : > { %v1831_v10 = vadd.f32 %v1830_v9, %v1800_v0 }
 0x6d5   : > { %v1862_v22 = vadd.f32 %v1861_v15, %v1831_v10 }
 0x6d6   : > { %v1888_v1 = vpop.f32.mrf.mxu0  ;;  %v1919_v35 = vpop.f32.mrf.mxu1 }
 0x6d7   : > { %v1889_v6 = vadd.f32 %v1888_v1, %v1856_v63 }
 0x6d9   : > { %v1916_v12 = vadd.f32 %v1915_v62, %v1889_v6  ;;  %v332_v62 = vadd.f32 %v331_v7, %v330_v53 }
 0x6db   : > { %v1922_v14 = vsub.f32 0.0, %v1916_v12  ;;  %1968 = vrot.lane.b32.xlu1 %v1916_v12, %s2209_s9  ;;  %v333_v1 = vrot.slane %v332_v62, 2 }
 0x6dd   : > { %v1930_v17 = vand.u32 2147483647, %v1922_v14  ;;  %v1924_v48 = vmax.f32 %v1922_v14, 0.0  ;;  %vm1926_vm13 = vcmp.ne.f32.partialorder %v1922_v14, %v1922_v14  ;;  %v334_v6 = vadd.f32 %v333_v1, %v332_v62 }
 0x6de   : > { %v1892_v19 = vpop.f32.mrf.mxu0 }
 0x6df   : > { %v1932_v24 = vsub.f32 0.0, %v1930_v17  ;;  %v1893_v26 = vadd.f32 %v1892_v19, %v1862_v22  ;;  %v335_v9 = vrot.slane %v334_v6, 1 }
 0x6e1   : > { %v1934_v21 = vmul.f32 1.442695, %v1932_v24  ;;  %v1920_v8 = vadd.f32 %v1919_v35, %v1893_v26  ;;  %v336_v10 = vadd.f32 %v335_v9, %v334_v6 }
 0x6e3   : > { %2168 = vpow2.f32 %v1934_v21  ;;  %v1923_v40 = vsub.f32 0.0, %v1920_v8  ;;  %1970 = vrot.lane.b32.xlu0 %v1920_v8, %s2209_s9  ;;  %2113 = vpush %v336_v10 }
 0x6e5   : > { %v1931_v11 = vand.u32 2147483647, %v1923_v40  ;;  %v1925_v46 = vmax.f32 %v1923_v40, 0.0  ;;  %vm1927_vm15 = vcmp.ne.f32.partialorder %v1923_v40, %v1923_v40 }
 0x6e7   : > { %v1933_v25 = vsub.f32 0.0, %v1931_v11  ;;  %v284_v11 = vsub.f32 1.0, %v2518_v45 }
 0x6e9   : > { %v2169_v27 = vpop.eup %2168  ;;  %v1936_v29 = vmul.f32 1.442695, %v1933_v25 }
 0x6ea   : > { %v1938_v4 = vadd.f32 1.0, %v2169_v27  ;;  %v1941_v32 = vmul.f32 -0.5, %v2169_v27  ;;  %v1944_v44 = vand.u32 2147483647, %v2169_v27 }
 0x6eb   : > { %2170 = vpow2.f32 %v1936_v29 }
 0x6ec   : > { %2172 = vlog2.f32 %v1938_v4  ;;  %v1942_v39 = vadd.f32 1.0, %v1941_v32  ;;  %vm1945_vm12 = vcmp.lt.f32.partialorder %v1944_v44, 0.0004427343 }
 0x6ee   : > { %v1943_v38 = vmul.f32 %v2169_v27, %v1942_v39  ;;  %v2032_v39 = vld [vmem:[%s2574_s6] sm:$0x3] }
 0x6f1   : > { %v2171_v42 = vpop.eup %2170 }
 0x6f2   : > { %v2173_v23 = vpop.eup %2172  ;;  %v1947_v33 = vadd.f32 1.0, %v2171_v42  ;;  %v1950_v3 = vmul.f32 -0.5, %v2171_v42  ;;  %v1953_v57 = vand.u32 2147483647, %v2171_v42 }
 0x6f3   : > { %v1940_v41 = vmul.f32 0.6931472, %v2173_v23 }
 0x6f4   : > { %2174 = vlog2.f32 %v1947_v33  ;;  %v1951_v43 = vadd.f32 1.0, %v1950_v3  ;;  %vm1954_vm14 = vcmp.lt.f32.partialorder %v1953_v57, 0.0004427343 }
 0x6f5   : > { %v1946_v5 = vsel %vm1945_vm12, %v1943_v38, %v1940_v41 }
 0x6f6   : > { %v1956_v30 = vadd.f32 %v1946_v5, %v1924_v48  ;;  %v1952_v31 = vmul.f32 %v2171_v42, %v1951_v43 }
 0x6f8   : > { %v1958_v34 = vsel %vm1926_vm13, %v1922_v14, %v1956_v30 }
 0x6f9   : > { %v1960_v37 = vsub.f32 0.0, %v1958_v34 }
 0x6fa   : > { %v2175_v49 = vpop.eup %2174 }
 0x6fb   : > { %v1949_v28 = vmul.f32 0.6931472, %v2175_v49  ;;  %v2008_v52 = vsel %vm348_vm2, %v1960_v37, 0.0  ;;  %v1962_v56 = vmul.f32 1.442695, %v1960_v37 }
 0x6fd   : > { %v1955_v36 = vsel %vm1954_vm14, %v1952_v31, %v1949_v28  ;;  %2176 = vpow2.f32 %v1962_v56 }
 0x6fe   : > { %v1957_v51 = vadd.f32 %v1955_v36, %v1925_v46 }
 0x700   : > { %v1959_v2 = vsel %vm1927_vm15, %v1923_v40, %v1957_v51 }
 0x701   : > { %v1961_v54 = vsub.f32 0.0, %v1959_v2 }
 0x703   : > { %v2020_v55 = vsel %vm348_vm2, %v1961_v54, 0.0  ;;  %v2177_v58 = vpop.eup %2176  ;;  %v1964_v59 = vmul.f32 1.442695, %v1961_v54 }
 0x705   : > { %2009 = vadd.xlane.f32.xlu1 %v2008_v52  ;;  %2178 = vpow2.f32 %v1964_v59 }
 0x70b   : > { %v2179_v0 = vpop.eup %2178 }
 0x70d   : > { %2021 = vadd.xlane.f32.xlu0 %v2020_v55 }
 0x721   : > { %1988 = vrot.lane.b32.xlu0 %v2177_v58, %s2195_s25 }
 0x74d   : > { %v1969_v60 = vpop.permute.xlu1 %1968 }
 0x74e   : > { %v1974_v47 = vadd.f32 %v1969_v60, %v2307_v16 }
 0x750   : > { %1978 = vrot.lane.b32.xlu2 %v1974_v47, %s2195_s25 }
 0x755   : > { %v1971_v61 = vpop.permute.xlu0 %1970 }
 0x756   : > { %v1975_v63 = vadd.f32 %v1971_v61, %v2303_v13 }
 0x758   : > { %1980 = vrot.lane.b32.xlu1 %v1975_v63, %s2195_s25  ;;  %1990 = vrot.lane.b32.xlu2 %v2179_v0, %s2195_s25  ;;  %s2114_s25 = spop %2113 }
 0x759   : > { %s338_s8 = smul.f32 4.0, %s2114_s25 }
 0x778   : > { %v2010_v16 = vpop.xlane.xlu1 %2009 }
 0x779   : > { %v2011_v12 = vrot.slane %v2010_v16, 4 }
 0x77b   : > { %v2012_v14 = vadd.f32 %v2011_v12, %v2010_v16 }
 0x77d   : > { %v2013_v15 = vrot.slane %v2012_v14, 2 }
 0x77f   : > { %v2014_v22 = vadd.f32 %v2013_v15, %v2012_v14 }
 0x780   : > { %v2022_v17 = vpop.xlane.xlu0 %2021 }
 0x781   : > { %v2023_v19 = vrot.slane %v2022_v17, 4  ;;  %v2015_v24 = vrot.slane %v2014_v22, 1 }
 0x783   : > { %v2024_v13 = vadd.f32 %v2023_v19, %v2022_v17  ;;  %v2016_v26 = vadd.f32 %v2015_v24, %v2014_v22 }
 0x785   : > { %v2025_v35 = vrot.slane %v2024_v13, 2  ;;  %2115 = vpush %v2016_v26 }
 0x787   : > { %v2026_v21 = vadd.f32 %v2025_v35, %v2024_v13 }
 0x789   : > { %v2027_v8 = vrot.slane %v2026_v21, 1 }
 0x78b   : > { %v2028_v40 = vadd.f32 %v2027_v8, %v2026_v21 }
 0x78d   : > { %2117 = vpush %v2028_v40 }
 0x793   : > { %v1989_v29 = vpop.permute.xlu0 %1988 }
 0x7aa   : > { %v1979_v25 = vpop.permute.xlu2 %1978 }
 0x7ab   : > { %v1984_v27 = vmul.f32 %v1979_v25, %v284_v11 }
 0x7ad   : > { %v1994_v4 = vmul.f32 %v1989_v29, %v1984_v27 }
 0x7af   : > { %v1996_v32 = vadd.f32 %v1994_v4, %v2317_v20  ;;  %v285_v20 = vsub.f32 1.0, %v2522_v50 }
 0x7b1   : > { %2000 = vrot.lane.b32.xlu0 %v1996_v32, %s2196_s26 }
 0x7b2   : > { %v1991_v38 = vpop.permute.xlu2 %1990 }
 0x7b6   : > { %s2116_s10 = spop %2115 }
 0x7b7   : > { %s2018_s11 = sadd.f32 %s2116_s10, %s338_s8 }
 0x7b9   : > { %v2019_v45 = vstv %s2018_s11 }
 0x7be   : > { %s2118_s12 = spop %2117 }
 0x7bf   : > { %s2030_s13 = sadd.f32 %s2118_s12, %s338_s8 }
 0x7c1   : > { %v2031_v42 = vstv %s2030_s13 }
 0x7c2   : > { %v2034_v44 = vsel %vm2033_vm0, %v2019_v45, %v2031_v42 }
 0x7c3   : > { %v2035_v23 = vadd.f32 %v2034_v44, %v2032_v39 }
 0x7c5   : > { %2036 = vst [vmem:[%s2574_s6] sm:$0x3] %v2035_v23 }
 0x7ca   : > { %v1981_v33 = vpop.permute.xlu1 %1980 }
 0x7cb   : > { %v1985_v41 = vmul.f32 %v1981_v33, %v285_v20 }
 0x7cd   : > { %v1995_v3 = vmul.f32 %v1991_v38, %v1985_v41 }
 0x7cf   : > { %v1997_v5 = vadd.f32 %v1995_v3, %v2312_v18 }
 0x7d1   : > { %2002 = vrot.lane.b32.xlu1 %v1997_v5, %s2196_s26 }
 0x823   : > { %v2001_v48 = vpop.permute.xlu0 %2000 }
 0x824   : > { %2006 = vst.msk [vmem:[%s2573_s5] sm:$0xff] %vm348_vm2, %v2001_v48 }
 0x843   : > { %v2003_v43 = vpop.permute.xlu1 %2002 }
 0x844   : > { %2007 = vst.msk [vmem:[%s2573_s5 + $0x8] sm:$0xff] %vm348_vm2, %v2003_v43 }
 0x845 PF: > { %s17_s21 = sadd.s32 1, %s2190_s21  }
 0x846   : > { %p14_p5 = scmp.ge.s32.totalorder %s17_s21, 6  }
 0x848   :  { %16 = sbr.rel (!%p14_p5) target bundleno = 1 (0x1), region = 87 }

</bundles_post_ra>
